<compile_context>
chip_gen: v5e
topology: v5e:2x2
jax: 0.10.0
libtpu: 0.0.40
codegen_flags: <defaults>
</compile_context>

<pallas_src>
import jax
import jax.numpy as jnp
from jax import lax
from jax.experimental import pallas as pl
from jax.experimental.pallas import tpu as pltpu


def _round_up(a, b):
    return (a + b - 1) // b * b


def graphsage_forward(x, adj, weight, bias, gamma, beta, *,
                      tile_m=128, tile_k=1024,
                      matmul_dtype=jnp.float32,
                      vmem_limit_bytes=48 * 1024 * 1024):
    """GraphSAGE forward. `weight` is the PyTorch Linear weight, shape (f_out, f_in)."""
    n, f_in = x.shape
    f_out = weight.shape[0]
    lane = 128

    assert tile_m % 8 == 0 and tile_k % 128 == 0

    f_in_p = _round_up(f_in + 1, lane)       # +1: fused "ones" column -> degree via the MXU
    f_out_p = _round_up(f_out, lane)

    # Row padding only to the row-tile size; K padding only to the K-tile size.
    n_rows_p = _round_up(n, tile_m)
    tk = _round_up(n, lane) if n <= tile_k else tile_k
    n_cols_p = _round_up(n, tk)
    grid_m = n_rows_p // tile_m
    grid_k = n_cols_p // tk
    n_x_rows = max(n_rows_p, n_cols_p)       # x must cover both adj columns and self rows

    f32 = jnp.float32
    # ---- host-side padding, built directly in the kernel dtypes (cropped at the end) ----
    adj_i8 = jnp.zeros((n_rows_p, n_cols_p), jnp.int8).at[:n, :n].set(adj.astype(jnp.int8))
    x_p = jnp.zeros((n_x_rows, f_in_p), matmul_dtype).at[:n, :f_in].set(x.astype(matmul_dtype))
    x_p = x_p.at[:, f_in].set(1.0)           # ones column: (adj + I) @ ones = degree
    w_p = jnp.zeros((f_in_p, f_out_p), matmul_dtype).at[:f_in, :f_out].set(
        weight.T.astype(matmul_dtype))
    b_p = jnp.zeros((1, f_out_p), f32).at[:, :f_out].set(bias.reshape(1, -1).astype(f32))
    g_p = jnp.ones((1, f_out_p), f32).at[:, :f_out].set(gamma.reshape(1, -1).astype(f32))
    bt_p = jnp.zeros((1, f_out_p), f32).at[:, :f_out].set(beta.reshape(1, -1).astype(f32))

    # -------- kernel 1: aggregate + linear + relu + row L2 norm + BN partial stats --------
    def agg_kernel(adj_ref, x_ref, w_ref, b_ref, h_ref, stats_ref, acc_ref):
        # program ids hoisted out of pl.when branches (required for clean lowering)
        i = pl.program_id(0)
        k = pl.program_id(1)
        k_last = pl.num_programs(1) - 1

        @pl.when(k == 0)
        def _():
            acc_ref[...] = jnp.zeros_like(acc_ref)

        # neighbor aggregation: int8 adjacency upcast in VMEM, f32 accumulation on the MXU
        xk = x_ref[pl.ds(k * tk, tk), :]
        acc_ref[...] += jnp.dot(adj_ref[...].astype(matmul_dtype), xk,
                                preferred_element_type=jnp.float32)

        @pl.when(k == k_last)
        def _():
            # add the self term; ones column => total[:, f_in] == (adj + I) row sum
            xs = x_ref[pl.ds(i * tile_m, tile_m), :]
            total = acc_ref[...] + xs.astype(jnp.float32)
            deg = total[:, f_in:f_in + 1]
            h_agg = total / deg                                  # mean over neighbors + self

            h = jnp.dot(h_agg.astype(matmul_dtype), w_ref[...],
                        preferred_element_type=jnp.float32) + b_ref[...]
            h = jnp.maximum(h, 0.0)                              # relu
            norm = jnp.sqrt(jnp.sum(h * h, axis=1, keepdims=True))
            h = h / (norm + 1e-7)                                # row L2 normalize
            h_ref[...] = h

            # per-tile BatchNorm partial statistics; padded rows masked out of batch stats
            row = i * tile_m + lax.broadcasted_iota(jnp.int32, (tile_m, 1), 0)
            hm = jnp.where(row < n, h, 0.0)
            stats_ref[0] = jnp.concatenate(
                [jnp.sum(hm, axis=0, keepdims=True),
                 jnp.sum(hm * hm, axis=0, keepdims=True)], axis=0)

    h_pre, stats = pl.pallas_call(
        agg_kernel,
        out_shape=(jax.ShapeDtypeStruct((n_rows_p, f_out_p), jnp.float32),
                   jax.ShapeDtypeStruct((grid_m, 2, f_out_p), jnp.float32)),
        grid_spec=pltpu.PrefetchScalarGridSpec(
            num_scalar_prefetch=0,
            grid=(grid_m, grid_k),
            in_specs=[
                pl.BlockSpec((tile_m, tk), lambda i, k: (i, k)),          # adj tile (int8)
                pl.BlockSpec((n_x_rows, f_in_p), lambda i, k: (0, 0)),    # x, VMEM-resident
                pl.BlockSpec((f_in_p, f_out_p), lambda i, k: (0, 0)),     # W^T padded
                pl.BlockSpec((1, f_out_p), lambda i, k: (0, 0)),          # bias (f32)
            ],
            out_specs=[
                pl.BlockSpec((tile_m, f_out_p), lambda i, k: (i, 0)),     # h (pre-BN)
                pl.BlockSpec((1, 2, f_out_p), lambda i, k: (i, 0, 0)),    # per-tile sum/sumsq
            ],
            scratch_shapes=[pltpu.VMEM((tile_m, f_in_p), jnp.float32)],
        ),
        compiler_params=pltpu.CompilerParams(
            dimension_semantics=("parallel", "arbitrary"),
            vmem_limit_bytes=vmem_limit_bytes,
        ),
    )(adj_i8, x_p, w_p, b_p)

    # -------- tiny cross-tile BN stats reduction (training: batch mean, biased var) --------
    inv_n = 1.0 / float(n)
    tot = jnp.sum(stats, axis=0)                       # (2, F): row0 = sum, row1 = sumsq
    mean = tot[0:1, :] * inv_n
    var = jnp.maximum(tot[1:2, :] * inv_n - mean * mean, 0.0)
    scale = g_p / jnp.sqrt(var + 1e-5)                 # gamma / sqrt(var + eps)
    shift = bt_p - mean * scale                        # beta - mean * scale

    # -------- kernel 2: apply BatchNorm (pure streaming elementwise pass) --------
    def bn_kernel(h_ref, scale_ref, shift_ref, o_ref):
        o_ref[...] = h_ref[...] * scale_ref[...] + shift_ref[...]

    out_p = pl.pallas_call(
        bn_kernel,
        out_shape=jax.ShapeDtypeStruct((n_rows_p, f_out_p), jnp.float32),
        grid_spec=pltpu.PrefetchScalarGridSpec(
            num_scalar_prefetch=0,
            grid=(grid_m,),
            in_specs=[
                pl.BlockSpec((tile_m, f_out_p), lambda i: (i, 0)),
                pl.BlockSpec((1, f_out_p), lambda i: (0, 0)),
                pl.BlockSpec((1, f_out_p), lambda i: (0, 0)),
            ],
            out_specs=pl.BlockSpec((tile_m, f_out_p), lambda i: (i, 0)),
        ),
        compiler_params=pltpu.CompilerParams(
            dimension_semantics=("parallel",),
            vmem_limit_bytes=vmem_limit_bytes,
        ),
    )(h_pre, scale, shift)

    return out_p[:n, :f_out]


def _reference(x, adj, weight, bias, gamma, beta):
    """Pure-jnp f32 GraphSAGE forward (training-mode BatchNorm)."""
    n = adj.shape[0]
    adj_si = adj + jnp.eye(n, dtype=adj.dtype)
    deg = jnp.sum(adj_si, axis=1, keepdims=True)
    agg = jnp.dot(adj_si, x) / deg
    h = jnp.dot(agg, weight.T) + bias.reshape(1, -1)
    h = jnp.maximum(h, 0.0)
    h = h / (jnp.linalg.norm(h, axis=1, keepdims=True) + 1e-7)
    mean = jnp.mean(h, axis=0, keepdims=True)
    var = jnp.mean((h - mean) ** 2, axis=0, keepdims=True)
    return (h - mean) / jnp.sqrt(var + 1e-5) * gamma.reshape(1, -1) + beta.reshape(1, -1)


if __name__ == "__main__":
    # N=60 is deliberately not a multiple of the row tile so the padded-row masking of the
    # BatchNorm statistics is exercised.
    N, F_IN, F_OUT = 60, 32, 32

    key = jax.random.PRNGKey(0)
    k_x, k_adj, k_w, k_b = jax.random.split(key, 4)

    x = jax.random.normal(k_x, (N, F_IN), dtype=jnp.float32)

    a = (jax.random.uniform(k_adj, (N, N)) < 0.25).astype(jnp.float32)
    adj = jnp.triu(a, 1)
    adj = adj + adj.T                                   # symmetric 0/1, no self loops

    # Linear(infeat, outfeat): xavier_uniform weight (out, in), default uniform bias
    xav = float(jnp.sqrt(6.0 / (F_IN + F_OUT)))
    weight = jax.random.uniform(k_w, (F_OUT, F_IN), minval=-xav, maxval=xav,
                                dtype=jnp.float32)
    b_bound = 1.0 / float(jnp.sqrt(jnp.asarray(F_IN, jnp.float32)))
    bias = jax.random.uniform(k_b, (F_OUT,), minval=-b_bound, maxval=b_bound,
                              dtype=jnp.float32)

    # BatchNorm1d affine params at fresh init
    gamma = jnp.ones((F_OUT,), dtype=jnp.float32)
    beta = jnp.zeros((F_OUT,), dtype=jnp.float32)

    out = graphsage_forward(x, adj, weight, bias, gamma, beta)
    out = jax.block_until_ready(out)
    assert out.shape == (N, F_OUT)
    assert bool(jnp.all(jnp.isfinite(out)))

    # Kernel keeps x / W / matmuls in f32 (only the 0/1 adjacency is stored narrow, which is
    # exact), so it can be checked tightly against the f32 reference. The margin covers
    # MXU accumulation-order / f32-matmul-strategy differences on hardware.
    ref = _reference(x, adj, weight, bias, gamma, beta)
    max_err = float(jnp.max(jnp.abs(out - ref)))
    assert jnp.allclose(out, ref, atol=3e-2, rtol=3e-2), \
        f"mismatch vs f32 reference (max abs err {max_err})"

    print("KERNEL_OK")
</pallas_src>

<mosaic_0001>
module attributes {stable_mosaic.version = 11 : i64} {
  func.func @agg_kernel(%arg0: i32, %arg1: i32, %arg2: memref<128x128xi8, #tpu.memory_space<vmem>>, %arg3: memref<128x128xf32, #tpu.memory_space<vmem>>, %arg4: memref<128x128xf32, #tpu.memory_space<vmem>>, %arg5: memref<1x128xf32, #tpu.memory_space<vmem>>, %arg6: memref<128x128xf32, #tpu.memory_space<vmem>>, %arg7: memref<1x2x128xf32, #tpu.memory_space<vmem>>, %arg8: memref<128x128xf32, #tpu.memory_space<vmem>>) attributes {dimension_semantics = [#tpu.dimension_semantics<parallel>, #tpu.dimension_semantics<arbitrary>], iteration_bounds = array<i64: 1, 1>, scalar_prefetch = 0 : i64, scratch_operands = 1 : i64, tpu.core_type = #tpu.core_type<tc>, window_params = [{transform_indices = @transform_0, window_bounds = array<i64: 128, 128>}, {pipeline_mode = #tpu.pipeline_mode<synchronous>, transform_indices = @transform_1, window_bounds = array<i64: 128, 128>}, {pipeline_mode = #tpu.pipeline_mode<synchronous>, transform_indices = @transform_2, window_bounds = array<i64: 128, 128>}, {pipeline_mode = #tpu.pipeline_mode<synchronous>, transform_indices = @transform_3, window_bounds = array<i64: 1, 128>}, {transform_indices = @transform_4, window_bounds = array<i64: 128, 128>}, {transform_indices = @transform_5, window_bounds = array<i64: 1, 2, 128>}]} {
    %c0_i32 = arith.constant 0 : i32
    %0 = arith.cmpi eq, %arg1, %c0_i32 : i32
    %1 = arith.extui %0 : i1 to i32
    %c0_i32_0 = arith.constant 0 : i32
    %2 = arith.cmpi ne, %1, %c0_i32_0 : i32
    scf.if %2 {
      %cst_9 = arith.constant 0.000000e+00 : f32
      %15 = vector.broadcast %cst_9 : f32 to vector<128x128xf32>
      %c0_10 = arith.constant 0 : index
      %c0_11 = arith.constant 0 : index
      %16 = vector.load %arg8[%c0_10, %c0_11] : memref<128x128xf32, #tpu.memory_space<vmem>>, vector<128x128xf32>
      tpu.vector_store %arg8[%c0_10, %c0_11], %15 {strides = array<i32>} : memref<128x128xf32, #tpu.memory_space<vmem>>, vector<128x128xf32>,
    } else {
    }
    %c128_i32 = arith.constant 128 : i32
    %3 = arith.muli %arg1, %c128_i32 : i32
    %4 = arith.index_cast %3 : i32 to index
    %c0 = arith.constant 0 : index
    %5 = vector.load %arg3[%4, %c0] : memref<128x128xf32, #tpu.memory_space<vmem>>, vector<128x128xf32>
    %c0_1 = arith.constant 0 : index
    %c0_2 = arith.constant 0 : index
    %6 = vector.load %arg8[%c0_1, %c0_2] : memref<128x128xf32, #tpu.memory_space<vmem>>, vector<128x128xf32>
    %c0_3 = arith.constant 0 : index
    %c0_4 = arith.constant 0 : index
    %7 = vector.load %arg2[%c0_3, %c0_4] : memref<128x128xi8, #tpu.memory_space<vmem>>, vector<128x128xi8>
    %8 = arith.sitofp %7 : vector<128x128xi8> to vector<128x128xf32>
    %cst = arith.constant dense<0.000000e+00> : vector<128x128xf32>
    %9 = tpu.matmul %8, %5, %cst {dimension_numbers = #tpu.dot_dimension_numbers<[1], [0], [0], [1], [0, 0, 1, 1], [], []>} : vector<128x128xf32>, vector<128x128xf32>, vector<128x128xf32> -> vector<128x128xf32>
    %10 = arith.addf %6, %9 : vector<128x128xf32>
    %c0_5 = arith.constant 0 : index
    %c0_6 = arith.constant 0 : index
    %11 = vector.load %arg8[%c0_5, %c0_6] : memref<128x128xf32, #tpu.memory_space<vmem>>, vector<128x128xf32>
    tpu.vector_store %arg8[%c0_5, %c0_6], %10 {strides = array<i32>} : memref<128x128xf32, #tpu.memory_space<vmem>>, vector<128x128xf32>,
    %c0_i32_7 = arith.constant 0 : i32
    %12 = arith.cmpi eq, %arg1, %c0_i32_7 : i32
    %13 = arith.extui %12 : i1 to i32
    %c0_i32_8 = arith.constant 0 : i32
    %14 = arith.cmpi ne, %13, %c0_i32_8 : i32
    scf.if %14 {
      %c128_i32_9 = arith.constant 128 : i32
      %15 = arith.muli %arg0, %c128_i32_9 : i32
      %16 = arith.index_cast %15 : i32 to index
      %c0_10 = arith.constant 0 : index
      %17 = vector.load %arg3[%16, %c0_10] : memref<128x128xf32, #tpu.memory_space<vmem>>, vector<128x128xf32>
      %c0_11 = arith.constant 0 : index
      %c0_12 = arith.constant 0 : index
      %18 = vector.load %arg8[%c0_11, %c0_12] : memref<128x128xf32, #tpu.memory_space<vmem>>, vector<128x128xf32>
      %19 = arith.addf %18, %17 : vector<128x128xf32>
      %20 = vector.extract_strided_slice %19 {offsets = [0, 32], sizes = [128, 1], strides = [1, 1]} : vector<128x128xf32> to vector<128x1xf32>
      %21 = vector.broadcast %20 : vector<128x1xf32> to vector<128x128xf32>
      %22 = arith.divf %19, %21 : vector<128x128xf32>
      %c0_13 = arith.constant 0 : index
      %c0_14 = arith.constant 0 : index
      %23 = vector.load %arg4[%c0_13, %c0_14] : memref<128x128xf32, #tpu.memory_space<vmem>>, vector<128x128xf32>
      %cst_15 = arith.constant dense<0.000000e+00> : vector<128x128xf32>
      %24 = tpu.matmul %22, %23, %cst_15 {dimension_numbers = #tpu.dot_dimension_numbers<[1], [0], [0], [1], [0, 0, 1, 1], [], []>} : vector<128x128xf32>, vector<128x128xf32>, vector<128x128xf32> -> vector<128x128xf32>
      %c0_16 = arith.constant 0 : index
      %c0_17 = arith.constant 0 : index
      %25 = vector.load %arg5[%c0_16, %c0_17] : memref<1x128xf32, #tpu.memory_space<vmem>>, vector<1x128xf32>
      %26 = vector.broadcast %25 : vector<1x128xf32> to vector<128x128xf32>
      %27 = arith.addf %24, %26 : vector<128x128xf32>
      %cst_18 = arith.constant 0.000000e+00 : f32
      %28 = vector.broadcast %cst_18 : f32 to vector<128x128xf32>
      %29 = arith.maximumf %27, %28 : vector<128x128xf32>
      %30 = arith.mulf %29, %29 : vector<128x128xf32>
      %cst_19 = arith.constant dense<0.000000e+00> : vector<128xf32>
      %31 = vector.multi_reduction <add>, %30, %cst_19 [1] : vector<128x128xf32> to vector<128xf32>
      %32 = vector.shape_cast %31 : vector<128xf32> to vector<128x1xf32>
      %33 = math.sqrt %32 : vector<128x1xf32>
      %cst_20 = arith.constant 1.000000e-07 : f32
      %34 = vector.broadcast %cst_20 : f32 to vector<128x1xf32>
      %35 = arith.addf %33, %34 : vector<128x1xf32>
      %36 = vector.broadcast %35 : vector<128x1xf32> to vector<128x128xf32>
      %37 = arith.divf %29, %36 : vector<128x128xf32>
      %c0_21 = arith.constant 0 : index
      %c0_22 = arith.constant 0 : index
      %38 = vector.load %arg6[%c0_21, %c0_22] : memref<128x128xf32, #tpu.memory_space<vmem>>, vector<128x128xf32>
      tpu.vector_store %arg6[%c0_21, %c0_22], %37 {strides = array<i32>} : memref<128x128xf32, #tpu.memory_space<vmem>>, vector<128x128xf32>,
      %c128_i32_23 = arith.constant 128 : i32
      %39 = arith.muli %arg0, %c128_i32_23 : i32
      %40 = tpu.iota {dimensions = array<i32: 0>} : vector<128x1xi32>
      %41 = vector.broadcast %39 : i32 to vector<128x1xi32>
      %42 = arith.addi %41, %40 : vector<128x1xi32>
      %c60_i32 = arith.constant 60 : i32
      %43 = vector.broadcast %c60_i32 : i32 to vector<128x1xi32>
      %44 = arith.cmpi slt, %42, %43 : vector<128x1xi32>
      %cst_24 = arith.constant 0.000000e+00 : f32
      %45 = vector.shape_cast %44 : vector<128x1xi1> to vector<128x1xi1>
      %46 = vector.broadcast %45 : vector<128x1xi1> to vector<128x128xi1>
      %47 = vector.broadcast %cst_24 : f32 to vector<128x128xf32>
      %48 = arith.select %46, %37, %47 : vector<128x128xi1>, vector<128x128xf32>
      %cst_25 = arith.constant dense<0.000000e+00> : vector<128xf32>
      %49 = vector.multi_reduction <add>, %48, %cst_25 [0] : vector<128x128xf32> to vector<128xf32>
      %50 = vector.shape_cast %49 : vector<128xf32> to vector<1x128xf32>
      %51 = arith.mulf %48, %48 : vector<128x128xf32>
      %cst_26 = arith.constant dense<0.000000e+00> : vector<128xf32>
      %52 = vector.multi_reduction <add>, %51, %cst_26 [0] : vector<128x128xf32> to vector<128xf32>
      %53 = vector.shape_cast %52 : vector<128xf32> to vector<1x128xf32>
      %54 = tpu.concatenate %50, %53 in 0 : vector<1x128xf32>, vector<1x128xf32> -> vector<2x128xf32>
      %c0_27 = arith.constant 0 : index
      %c0_28 = arith.constant 0 : index
      %c0_29 = arith.constant 0 : index
      %55 = vector.load %arg7[%c0_27, %c0_28, %c0_29] : memref<1x2x128xf32, #tpu.memory_space<vmem>>, vector<1x2x128xf32>
      %56 = vector.shape_cast %55 : vector<1x2x128xf32> to vector<2x128xf32>
      %57 = vector.shape_cast %54 : vector<2x128xf32> to vector<1x2x128xf32>
      tpu.vector_store %arg7[%c0_27, %c0_28, %c0_29], %57 {strides = array<i32>} : memref<1x2x128xf32, #tpu.memory_space<vmem>>, vector<1x2x128xf32>,
    } else {
    }
    return
  }
  func.func @transform_0(%arg0: i32, %arg1: i32) -> (i32, i32) {
    %c0_i32 = arith.constant 0 : i32
    return %arg0, %arg1 : i32, i32
  }
  func.func @transform_1(%arg0: i32, %arg1: i32) -> (i32, i32) {
    %c0_i32 = arith.constant 0 : i32
    %c0_i32_0 = arith.constant 0 : i32
    %c0_i32_1 = arith.constant 0 : i32
    return %c0_i32, %c0_i32_0 : i32, i32
  }
  func.func @transform_2(%arg0: i32, %arg1: i32) -> (i32, i32) {
    %c0_i32 = arith.constant 0 : i32
    %c0_i32_0 = arith.constant 0 : i32
    %c0_i32_1 = arith.constant 0 : i32
    return %c0_i32, %c0_i32_0 : i32, i32
  }
  func.func @transform_3(%arg0: i32, %arg1: i32) -> (i32, i32) {
    %c0_i32 = arith.constant 0 : i32
    %c0_i32_0 = arith.constant 0 : i32
    %c0_i32_1 = arith.constant 0 : i32
    return %c0_i32, %c0_i32_0 : i32, i32
  }
  func.func @transform_4(%arg0: i32, %arg1: i32) -> (i32, i32) {
    %c0_i32 = arith.constant 0 : i32
    %c0_i32_0 = arith.constant 0 : i32
    return %arg0, %c0_i32 : i32, i32
  }
  func.func @transform_5(%arg0: i32, %arg1: i32) -> (i32, i32, i32) {
    %c0_i32 = arith.constant 0 : i32
    %c0_i32_0 = arith.constant 0 : i32
    %c0_i32_1 = arith.constant 0 : i32
    return %arg0, %c0_i32, %c0_i32_0 : i32, i32, i32
  }
}

</mosaic_0001>

<bundles_post_ra>
// kernel: tpu_custom_call.1
= control target key start
LH: loop header
LB: loop body
LE: loop exit
PB: predicated region body
PF: predicated region fallthrough
CT: control target
= control target key end

     0   :  { %11 = vsyncpa [#allocation4], 0  ;;  %s2476_s0 = inlined_call_operand.hbm [shape: s8[128,128], index: 0, kind: input, shape index: {}]   ;;  %s2477_s1 = inlined_call_operand.hbm [shape: f32[128,128], index: 1, kind: input, shape index: {}]   ;;  %s2478_s2 = inlined_call_operand.hbm [shape: f32[128,128], index: 2, kind: input, shape index: {}]   ;;  %s2479_s3 = inlined_call_operand.vmem [shape: f32[1,128], index: 3, kind: input, shape index: {}]   ;;  %s2480_s4 = inlined_call_operand.hbm [shape: f32[128,128], index: 4, kind: output, shape index: {0}]   ;;  %s2481_s5 = inlined_call_operand.hbm [shape: f32[1,2,128], index: 5, kind: output, shape index: {1}]  }
   0x1   :  { %12 = vsyncpa [#allocation7], 0 }
   0x2   :  { %13 = vsyncpa [#allocation5], 0 }
   0x3   :  { %14 = vsyncpa [#allocation11], 0  ;;  %s32_s20 = sshll.u32 %s2477_s1, 4  ;;  %s1704_s21 = smov [#allocation6]   ;;  %s33_s20 = int_to_ptr.hbm [resolvable:$true] %s32_s20 }
   0x4   :  { %s34_s22 = sshll.u32 %s1704_s21, 4  ;;  %s19_s25 = sshll.u32 %s2476_s0, 4  ;;  %s35_s22 = int_to_ptr.vmem [resolvable:$true] %s34_s22  ;;  %s20_s25 = int_to_ptr.hbm [resolvable:$true] %s19_s25 }
   0x5   :  { %s1705_s26 = smov 128   ;;  %s1706_s27 = smov 8  }
   0x6   :  { %40 = dma.hbm_to_vmem [thread:$0]  %s33_s20, 2048, %s35_s22, [#allocation7], %s1705_s26, %s1705_s26, %s1706_s27  }
   0x7   :  { %s1707_s28 = smov [#allocation3]   ;;  %s45_s1 = sshll.u32 %s2478_s2, 4  ;;  %s46_s1 = int_to_ptr.hbm [resolvable:$true] %s45_s1 }
   0x8   :  { %s21_s29 = sshll.u32 %s1707_s28, 4  ;;  %s1708_s0 = smov [#allocation8]   ;;  %s22_s29 = int_to_ptr.vmem [resolvable:$true] %s21_s29 }
   0x9   :  { %27 = dma.hbm_to_vmem [thread:$0]  %s20_s25, 512, %s22_s29, [#allocation4], %s1705_s26, %s1705_s26, %s1706_s27  }
   0xa   :  { %s47_s7 = sshll.u32 %s1708_s0, 4  ;;  %s48_s7 = int_to_ptr.vmem [resolvable:$true] %s47_s7 }
   0xb   :  { %53 = dma.hbm_to_vmem [thread:$0]  %s46_s1, 2048, %s48_s7, [#allocation7], %s1705_s26, %s1705_s26, %s1706_s27  }
   0xc   :  { %1696 = dma.done.wait [#allocation4], 512  }
   0xd   :  { %1697 = vsyncadd [#allocation4], 4294966784 }
   0xe   :  { %1698 = dma.done.wait [#allocation7], 4096  }
   0xf   :  { %1699 = vsyncadd [#allocation7], 4294963200  ;;  %v1760_v0 = vld [vmem:[#allocation6 + $0x78] sm:$0xff]  ;;  %v1762_v1 = vld [vmem:[#allocation6 + $0x70] sm:$0xff]  ;;  %v1709_v52 = vmov 32   ;;  %s1406_s12 = sshll.u32 %s2480_s4, 4  ;;  %s1407_s12 = int_to_ptr.hbm [resolvable:$true] %s1406_s12 }
  0x10   :  { %158 = vmatpush.msra.mxu0 %v1760_v0  ;;  %1436 = vmatpush.msra.mxu2 %v1760_v0  ;;  %v1766_v2 = vld [vmem:[#allocation6 + $0x68] sm:$0xff]  ;;  %v1770_v3 = vld [vmem:[#allocation6 + $0x60] sm:$0xff]  ;;  %v1774_v4 = vld [vmem:[#allocation6 + $0x58] sm:$0xff]  ;;  %s1711_s4 = smov [#allocation10]   ;;  %s1420_s16 = sshll.u32 %s2481_s5, 4  ;;  %s1421_s16 = int_to_ptr.hbm [resolvable:$true] %s1420_s16 }
  0x11   :  { %v1778_v5 = vld [vmem:[#allocation6 + $0x50] sm:$0xff]  ;;  %v1782_v6 = vld [vmem:[#allocation6 + $0x48] sm:$0xff]  ;;  %v1786_v7 = vld [vmem:[#allocation6 + $0x40] sm:$0xff]  ;;  %1476 = vset.pattern.permute.xlu0 %v1709_v52  ;;  %1477 = vset.pattern.permute.xlu1 %v1709_v52  ;;  %s1418_s13 = sshll.u32 %s1711_s4, 4  ;;  %s1419_s13 = int_to_ptr.vmem [resolvable:$true] %s1418_s13 }
  0x12   :  { %159 = vmatpush.msra.mxu0 %v1762_v1  ;;  %1437 = vmatpush.msra.mxu2 %v1762_v1  ;;  %v1790_v8 = vld [vmem:[#allocation6 + $0x38] sm:$0xff]  ;;  %v1794_v9 = vld [vmem:[#allocation6 + $0x30] sm:$0xff]  ;;  %v1798_v10 = vld [vmem:[#allocation6 + $0x28] sm:$0xff] }
  0x13   :  { %v1802_v11 = vld [vmem:[#allocation6 + $0x20] sm:$0xff]  ;;  %v124_v13 = vld [vmem:[#allocation3 + $0x10] sm:$0xff]  ;;  %v1806_v14 = vld [vmem:[#allocation6 + $0x18] sm:$0xff]  ;;  %1478 = vset.pattern.permute.xlu2 %v1709_v52 }
  0x14   :  { %160 = vmatpush.msra.mxu0 %v1766_v2  ;;  %1438 = vmatpush.msra.mxu2 %v1766_v2  ;;  %v122_v12 = vld [vmem:[#allocation3] sm:$0xff]  ;;  %v1810_v15 = vld [vmem:[#allocation6 + $0x10] sm:$0xff]  ;;  %v134_v17 = vunpack.c.0.s8 %v124_v13  ;;  %v1814_v18 = vld [vmem:[#allocation6 + $0x8] sm:$0xff]  ;;  %v135_v23 = vunpack.c.1.s8 %v124_v13  ;;  %v136_v27 = vunpack.c.2.s8 %v124_v13  ;;  %v137_v31 = vunpack.c.3.s8 %v124_v13 }
  0x15   :  { %v126_v16 = vunpack.c.0.s8 %v122_v12  ;;  %v90_v19 = vld [vmem:[#allocation6] sm:$0xff]  ;;  %v127_v22 = vunpack.c.1.s8 %v122_v12  ;;  %v128_v26 = vunpack.c.2.s8 %v122_v12  ;;  %v129_v30 = vunpack.c.3.s8 %v122_v12  ;;  %v123_v34 = vld [vmem:[#allocation3 + $0x8] sm:$0xff]  ;;  %v125_v35 = vld [vmem:[#allocation3 + $0x18] sm:$0xff] }
  0x16   :  { %161 = vmatpush.msra.mxu0 %v1770_v3  ;;  %1439 = vmatpush.msra.mxu2 %v1770_v3  ;;  %v150_v21 = vcvt.s32.f32 %v134_v17  ;;  %v151_v25 = vcvt.s32.f32 %v135_v23  ;;  %v152_v29 = vcvt.s32.f32 %v136_v27  ;;  %v153_v33 = vcvt.s32.f32 %v137_v31  ;;  %v638_v27 = vld [vmem:[#allocation8 + $0x50] sm:$0xff]  ;;  %v633_v31 = vld [vmem:[#allocation8 + $0x28] sm:$0xff] }
  0x17   :  { %v142_v20 = vcvt.s32.f32 %v126_v16  ;;  %v143_v24 = vcvt.s32.f32 %v127_v22  ;;  %v144_v28 = vcvt.s32.f32 %v128_v26  ;;  %v145_v32 = vcvt.s32.f32 %v129_v30  ;;  %v641_v26 = vld [vmem:[#allocation8 + $0x68] sm:$0xff]  ;;  %v634_v30 = vld [vmem:[#allocation8 + $0x30] sm:$0xff] }
  0x18   :  { %162 = vmatpush.msra.mxu0 %v1774_v4  ;;  %1440 = vmatpush.msra.mxu2 %v1774_v4  ;;  %v130_v36 = vunpack.c.0.s8 %v123_v34  ;;  %v138_v37 = vunpack.c.0.s8 %v125_v35  ;;  %v131_v40 = vunpack.c.1.s8 %v123_v34  ;;  %v139_v41 = vunpack.c.1.s8 %v125_v35 }
  0x19   :  { %v132_v44 = vunpack.c.2.s8 %v123_v34  ;;  %v140_v45 = vunpack.c.2.s8 %v125_v35  ;;  %v133_v48 = vunpack.c.3.s8 %v123_v34  ;;  %v141_v49 = vunpack.c.3.s8 %v125_v35  ;;  %v630_v34 = vld [vmem:[#allocation8 + $0x10] sm:$0xff]  ;;  %v629_v35 = vld [vmem:[#allocation8 + $0x8] sm:$0xff] }
  0x1a   :  { %163 = vmatpush.msra.mxu0 %v1778_v5  ;;  %1441 = vmatpush.msra.mxu2 %v1778_v5  ;;  %v146_v38 = vcvt.s32.f32 %v130_v36  ;;  %v154_v39 = vcvt.s32.f32 %v138_v37  ;;  %v147_v42 = vcvt.s32.f32 %v131_v40  ;;  %v155_v43 = vcvt.s32.f32 %v139_v41  ;;  %v628_v36 = vld [vmem:[#allocation8] sm:$0xff] }
  0x1b   :  { %v148_v46 = vcvt.s32.f32 %v132_v44  ;;  %v156_v47 = vcvt.s32.f32 %v140_v45  ;;  %v149_v50 = vcvt.s32.f32 %v133_v48  ;;  %v157_v51 = vcvt.s32.f32 %v141_v49 }
  0x1c   :  { %164 = vmatpush.msra.mxu0 %v1782_v6  ;;  %1442 = vmatpush.msra.mxu2 %v1782_v6 }
  0x1e   :  { %165 = vmatpush.msra.mxu0 %v1786_v7  ;;  %1443 = vmatpush.msra.mxu2 %v1786_v7 }
  0x20   :  { %166 = vmatpush.msra.mxu0 %v1790_v8  ;;  %1444 = vmatpush.msra.mxu2 %v1790_v8 }
  0x22   :  { %167 = vmatpush.msra.mxu0 %v1794_v9  ;;  %1445 = vmatpush.msra.mxu2 %v1794_v9 }
  0x24   :  { %168 = vmatpush.msra.mxu0 %v1798_v10  ;;  %1446 = vmatpush.msra.mxu2 %v1798_v10 }
  0x26   :  { %169 = vmatpush.msra.mxu0 %v1802_v11  ;;  %1447 = vmatpush.msra.mxu2 %v1802_v11 }
  0x28   :  { %170 = vmatpush.msra.mxu0 %v1806_v14  ;;  %1448 = vmatpush.msra.mxu2 %v1806_v14 }
  0x2a   :  { %171 = vmatpush.msra.mxu0 %v1810_v15  ;;  %1449 = vmatpush.msra.mxu2 %v1810_v15 }
  0x2c   :  { %172 = vmatpush.msra.mxu0 %v1814_v18  ;;  %1450 = vmatpush.msra.mxu2 %v1814_v18 }
  0x2e   :  { %173 = vmatpush.msra.mxu0 %v90_v19  ;;  %1451 = vmatpush.msra.mxu2 %v90_v19 }
  0x2f   :  { %174 = vmatmul.f32.vlgmr.msra.gmra.mxu0 %v142_v20  ;;  %198 = vmatmul.f32.vlgmr.msra.gmra.mxu2 %v150_v21 }
  0x37   :  { %177 = vmatmul.f32.gmra.mxu0 %v143_v24  ;;  %201 = vmatmul.f32.gmra.mxu2 %v151_v25  ;;  %v642_v25 = vld [vmem:[#allocation8 + $0x70] sm:$0xff] }
  0x3f   :  { %180 = vmatmul.f32.gmra.mxu0 %v144_v28  ;;  %204 = vmatmul.f32.gmra.mxu2 %v152_v29  ;;  %v637_v28 = vld [vmem:[#allocation8 + $0x48] sm:$0xff]  ;;  %v635_v29 = vld [vmem:[#allocation8 + $0x38] sm:$0xff] }
  0x47   :  { %183 = vmatmul.f32.gmra.mxu0 %v145_v32  ;;  %207 = vmatmul.f32.gmra.mxu2 %v153_v33  ;;  %v632_v32 = vld [vmem:[#allocation8 + $0x20] sm:$0xff]  ;;  %v631_v33 = vld [vmem:[#allocation8 + $0x18] sm:$0xff] }
  0x4f   :  { %186 = vmatmul.f32.gmra.mxu0 %v146_v38  ;;  %210 = vmatmul.f32.gmra.mxu2 %v154_v39 }
  0x57   :  { %189 = vmatmul.f32.gmra.mxu0 %v147_v42  ;;  %213 = vmatmul.f32.gmra.mxu2 %v155_v43 }
  0x5f   :  { %192 = vmatmul.f32.gmra.mxu0 %v148_v46  ;;  %216 = vmatmul.f32.gmra.mxu2 %v156_v47 }
  0x67   :  { %195 = vmatmul.f32.gmra.mxu0 %v149_v50  ;;  %219 = vmatmul.f32.gmra.mxu2 %v157_v51 }
  0xac   :  { %v175_v53 = vpop.f32.mrf.mxu0 }
  0xad   :  { %v1820_v54 = vadd.f32 %v175_v53, %v90_v19 }
  0xaf   :  { %310 = vperm.xlu0 %1476, %v1820_v54  }
  0xb2   :  { %v199_v55 = vpop.f32.mrf.mxu2 }
  0xb3   :  { %v1824_v56 = vadd.f32 %v199_v55, %v1786_v7 }
  0xb4   :  { %v178_v57 = vpop.f32.mrf.mxu0 }
  0xb5   :  { %v1827_v58 = vadd.f32 %v178_v57, %v1814_v18  ;;  %350 = vperm.xlu1 %1477, %v1824_v56   ;;  %v643_v18 = vld [vmem:[#allocation8 + $0x78] sm:$0xff] }
  0xb6   :  { %648 = vmatpush.msra.mxu1 %v643_v18  ;;  %1452 = vmatpush.msra.mxu3 %v643_v18 }
  0xb7   :  { %315 = vperm.xlu0 %1476, %v1827_v58  }
  0xb8   :  { %649 = vmatpush.msra.mxu1 %v642_v25  ;;  %1453 = vmatpush.msra.mxu3 %v642_v25 }
  0xba   :  { %v202_v59 = vpop.f32.mrf.mxu2  ;;  %650 = vmatpush.msra.mxu1 %v641_v26  ;;  %1454 = vmatpush.msra.mxu3 %v641_v26 }
  0xbb   :  { %v1832_v60 = vadd.f32 %v202_v59, %v1782_v6 }
  0xbc   :  { %v181_v61 = vpop.f32.mrf.mxu0 }
  0xbd   :  { %v1835_v62 = vadd.f32 %v181_v61, %v1810_v15  ;;  %355 = vperm.xlu2 %1478, %v1832_v60  }
  0xbf   :  { %320 = vperm.xlu1 %1477, %v1835_v62  }
  0xc2   :  { %v205_v63 = vpop.f32.mrf.mxu2 }
  0xc3   :  { %v1840_v7 = vadd.f32 %v205_v63, %v1778_v5 }
  0xc4   :  { %v184_v12 = vpop.f32.mrf.mxu0 }
  0xc5   :  { %v1843_v13 = vadd.f32 %v184_v12, %v1806_v14  ;;  %360 = vperm.xlu0 %1476, %v1840_v7  }
  0xc7   :  { %325 = vperm.xlu2 %1478, %v1843_v13  }
  0xca   :  { %v208_v6 = vpop.f32.mrf.mxu2 }
  0xcb   :  { %v1848_v15 = vadd.f32 %v208_v6, %v1774_v4 }
  0xcc   :  { %v187_v16 = vpop.f32.mrf.mxu0 }
  0xcd   :  { %v1851_v17 = vadd.f32 %v187_v16, %v1802_v11 }
  0xcf   :  { %365 = vperm.xlu2 %1478, %v1848_v15   ;;  %330 = vperm.xlu1 %1477, %v1851_v17  }
  0xd2   :  { %v211_v5 = vpop.f32.mrf.mxu2 }
  0xd3   :  { %v1856_v14 = vadd.f32 %v211_v5, %v1770_v3 }
  0xd4   :  { %v190_v19 = vpop.f32.mrf.mxu0 }
  0xd5   :  { %v1859_v20 = vadd.f32 %v190_v19, %v1798_v10 }
  0xd7   :  { %370 = vperm.xlu1 %1477, %v1856_v14   ;;  %335 = vperm.xlu0 %1476, %v1859_v20  }
  0xda   :  { %v214_v4 = vpop.f32.mrf.mxu2 }
  0xdb   :  { %v1864_v11 = vadd.f32 %v214_v4, %v1766_v2 }
  0xdc   :  { %v193_v21 = vpop.f32.mrf.mxu0 }
  0xdd   :  { %v1867_v22 = vadd.f32 %v193_v21, %v1794_v9 }
  0xdf   :  { %375 = vperm.xlu0 %1476, %v1864_v11   ;;  %340 = vperm.xlu2 %1478, %v1867_v22  }
  0xe2   :  { %v217_v3 = vpop.f32.mrf.mxu2 }
  0xe3   :  { %v1872_v10 = vadd.f32 %v217_v3, %v1762_v1  ;;  %v640_v1 = vld [vmem:[#allocation8 + $0x60] sm:$0xff] }
  0xe4   :  { %v196_v23 = vpop.f32.mrf.mxu0  ;;  %651 = vmatpush.msra.mxu1 %v640_v1  ;;  %1455 = vmatpush.msra.mxu3 %v640_v1 }
  0xe5   :  { %v1875_v24 = vadd.f32 %v196_v23, %v1790_v8  ;;  %v639_v8 = vld [vmem:[#allocation8 + $0x58] sm:$0xff] }
  0xe6   :  { %652 = vmatpush.msra.mxu1 %v639_v8  ;;  %1456 = vmatpush.msra.mxu3 %v639_v8 }
  0xe7   :  { %380 = vperm.xlu2 %1478, %v1872_v10   ;;  %345 = vperm.xlu1 %1477, %v1875_v24  }
  0xe8   :  { %653 = vmatpush.msra.mxu1 %v638_v27  ;;  %1457 = vmatpush.msra.mxu3 %v638_v27 }
  0xea   :  { %v220_v2 = vpop.f32.mrf.mxu2  ;;  %654 = vmatpush.msra.mxu1 %v637_v28  ;;  %1458 = vmatpush.msra.mxu3 %v637_v28 }
  0xeb   :  { %v1880_v9 = vadd.f32 %v220_v2, %v1760_v0  ;;  %v636_v0 = vld [vmem:[#allocation8 + $0x40] sm:$0xff] }
  0xec   :  { %655 = vmatpush.msra.mxu1 %v636_v0  ;;  %1459 = vmatpush.msra.mxu3 %v636_v0 }
  0xed   :  { %385 = vperm.xlu0 %1476, %v1880_v9  }
  0xee   :  { %656 = vmatpush.msra.mxu1 %v635_v29  ;;  %1460 = vmatpush.msra.mxu3 %v635_v29 }
  0xf0   :  { %657 = vmatpush.msra.mxu1 %v634_v30  ;;  %1461 = vmatpush.msra.mxu3 %v634_v30 }
  0xf2   :  { %658 = vmatpush.msra.mxu1 %v633_v31  ;;  %1462 = vmatpush.msra.mxu3 %v633_v31 }
  0xf4   :  { %659 = vmatpush.msra.mxu1 %v632_v32  ;;  %1463 = vmatpush.msra.mxu3 %v632_v32 }
  0xf6   :  { %660 = vmatpush.msra.mxu1 %v631_v33  ;;  %1464 = vmatpush.msra.mxu3 %v631_v33 }
  0xf8   :  { %661 = vmatpush.msra.mxu1 %v630_v34  ;;  %1465 = vmatpush.msra.mxu3 %v630_v34 }
  0xfa   :  { %662 = vmatpush.msra.mxu1 %v629_v35  ;;  %1466 = vmatpush.msra.mxu3 %v629_v35 }
  0xfc   :  { %663 = vmatpush.msra.mxu1 %v628_v36  ;;  %1467 = vmatpush.msra.mxu3 %v628_v36 }
 0x117   :  { %v1883_v37 = vpop.permute.xlu2 %355 }
 0x118   :  { %1480 = vrcp.f32 %v1883_v37  ;;  %vm528_vm4 = vweird.f32 %v1883_v37  ;;  %v532_v26 = vand.u32 2147483647, %v1883_v37 }
 0x11a   :  { %vm533_vm15 = vcmp.eq.f32.partialorder %v532_v26, 8.507059e+37 }
 0x11e   :  { %v1888_v40 = vpop.eup %1480 }
 0x11f   :  { %v524_v43 = vmul.f32 %v1888_v40, %v1883_v37  ;;  %vm529_vm9 = vweird.f32 %v1888_v40 }
 0x120   :  { %vm530_vm14 = vmor %vm528_vm4, %vm529_vm9 }
 0x121   :  { %v311_v38 = vpop.permute.xlu0 %310  ;;  %v1886_v39 = vpop.permute.xlu2 %325  ;;  %v525_v47 = vsub.f32 1.0, %v524_v43 }
 0x122   :  { %1482 = vrcp.f32 %v311_v38  ;;  %v397_v48 = vand.u32 2147483647, %v311_v38  ;;  %v399_v49 = vand.u32 2147483648, %v311_v38  ;;  %vm393_vm1 = vweird.f32 %v311_v38 }
 0x123   :  { %v526_v59 = vmul.f32 %v1888_v40, %v525_v47 }
 0x124   :  { %vm398_vm3 = vcmp.eq.f32.partialorder %v397_v48, 8.507059e+37  ;;  %v400_v61 = vor.u32 1.1754944e-38, %v399_v49 }
 0x125   :  { %v527_v0 = vadd.f32 %v1888_v40, %v526_v59 }
 0x127   :  { %v351_v41 = vpop.permute.xlu1 %350 }
 0x128   :  { %v1483_v42 = vpop.eup %1482  ;;  %1484 = vrcp.f32 %v351_v41  ;;  %v517_v19 = vand.u32 2147483647, %v351_v41  ;;  %v519_v4 = vand.u32 2147483648, %v351_v41  ;;  %vm513_vm6 = vweird.f32 %v351_v41 }
 0x129   :  { %v389_v44 = vmul.f32 %v1483_v42, %v311_v38  ;;  %v1892_v45 = vpop.permute.xlu0 %315  ;;  %vm394_vm0 = vweird.f32 %v1483_v42  ;;  %v1896_v52 = vpop.permute.xlu2 %365 }
 0x12a   :  { %1486 = vrcp.f32 %v1892_v45  ;;  %vm395_vm2 = vmor %vm393_vm1, %vm394_vm0  ;;  %v414_v25 = vand.u32 2147483648, %v1892_v45  ;;  %v412_v27 = vand.u32 2147483647, %v1892_v45  ;;  %v520_v28 = vor.u32 1.1754944e-38, %v519_v4 }
 0x12b   :  { %v390_v46 = vsub.f32 1.0, %v389_v44  ;;  %1488 = vrcp.f32 %v1886_v39  ;;  %vm518_vm10 = vcmp.eq.f32.partialorder %v517_v19, 8.507059e+37  ;;  %vm408_vm11 = vweird.f32 %v1892_v45 }
 0x12c   :  { %1490 = vrcp.f32 %v1896_v52  ;;  %v415_v36 = vor.u32 1.1754944e-38, %v414_v25  ;;  %vm413_vm13 = vcmp.eq.f32.partialorder %v412_v27, 8.507059e+37  ;;  %vm438_vm1 = vweird.f32 %v1886_v39 }
 0x12d   :  { %v391_v50 = vmul.f32 %v1483_v42, %v390_v46 }
 0x12e   :  { %v1485_v51 = vpop.eup %1484 }
 0x12f   :  { %v509_v53 = vmul.f32 %v1485_v51, %v351_v41  ;;  %v392_v55 = vadd.f32 %v1483_v42, %v391_v50  ;;  %vm514_vm5 = vweird.f32 %v1485_v51 }
 0x130   :  { %v1487_v57 = vpop.eup %1486  ;;  %vm515_vm8 = vmor %vm513_vm6, %vm514_vm5 }
 0x131   :  { %v1900_v63 = vpop.eup %1488  ;;  %v510_v12 = vsub.f32 1.0, %v509_v53  ;;  %v404_v6 = vmul.f32 %v1487_v57, %v1892_v45  ;;  %v1904_v16 = vpop.permute.xlu1 %320  ;;  %v396_v18 = vsel %vm395_vm2, %v1483_v42, %v392_v55  ;;  %vm409_vm7 = vweird.f32 %v1487_v57 }
 0x132   :  { %1492 = vrcp.f32 %v1904_v16  ;;  %v401_v5 = vsel %vm398_vm3, %v400_v61, %v396_v18  ;;  %v434_v2 = vmul.f32 %v1900_v63, %v1886_v39  ;;  %v1916_v29 = vpop.eup %1490  ;;  %vm410_vm12 = vmor %vm408_vm11, %vm409_vm7  ;;  %v531_v45 = vsel %vm530_vm14, %v1888_v40, %v527_v0 }
 0x133   :  { %v511_v21 = vmul.f32 %v1485_v51, %v510_v12  ;;  %v405_v3 = vsub.f32 1.0, %v404_v6  ;;  %v402_v23 = vmul.f32 %v401_v5, %v1820_v54  ;;  %v534_v54 = vand.u32 2147483648, %v1883_v37 }
 0x134   :  { %v435_v34 = vsub.f32 1.0, %v434_v2  ;;  %v554_v43 = vmul.f32 %v1916_v29, %v1896_v52  ;;  %v429_v50 = vand.u32 2147483648, %v1904_v16  ;;  %v427_v53 = vand.u32 2147483647, %v1904_v16 }
 0x135   :  { %v406_v1 = vmul.f32 %v1487_v57, %v405_v3  ;;  %664 = vmatmul.f32.vlgmr.msra.gmra.mxu1 %v402_v23  ;;  %v512_v8 = vadd.f32 %v1485_v51, %v511_v21  ;;  %v535_v48 = vor.u32 1.1754944e-38, %v534_v54  ;;  %vm423_vm2 = vweird.f32 %v1904_v16 }
 0x136   :  { %v555_v40 = vsub.f32 1.0, %v554_v43  ;;  %v444_v61 = vand.u32 2147483648, %v1886_v39  ;;  %v430_v6 = vor.u32 1.1754944e-38, %v429_v50  ;;  %vm439_vm4 = vweird.f32 %v1900_v63 }
 0x137   :  { %v1918_v30 = vpop.permute.xlu0 %360  ;;  %v516_v31 = vsel %vm515_vm8, %v1485_v51, %v512_v8  ;;  %v407_v32 = vadd.f32 %v1487_v57, %v406_v1  ;;  %v536_v51 = vsel %vm533_vm15, %v535_v48, %v531_v45  ;;  %vm428_vm5 = vcmp.eq.f32.partialorder %v427_v53, 8.507059e+37  ;;  %vm440_vm7 = vmor %vm438_vm1, %vm439_vm4 }
 0x138   :  { %v1493_v33 = vpop.eup %1492  ;;  %1494 = vrcp.f32 %v1918_v30  ;;  %v521_v35 = vsel %vm518_vm10, %v520_v28, %v516_v31  ;;  %v537_v12 = vmul.f32 %v536_v51, %v1832_v60  ;;  %v556_v21 = vmul.f32 %v1916_v29, %v555_v40 }
 0x139   :  { %v419_v38 = vmul.f32 %v1493_v33, %v1904_v16  ;;  %v522_v41 = vmul.f32 %v521_v35, %v1824_v56  ;;  %v411_v42 = vsel %vm410_vm12, %v1487_v57, %v407_v32  ;;  %v436_v56 = vmul.f32 %v1900_v63, %v435_v34  ;;  %v1934_v49 = vpop.permute.xlu2 %340 }
 0x13a   :  { %v416_v44 = vsel %vm413_vm13, %v415_v36, %v411_v42  ;;  %vm424_vm0 = vweird.f32 %v1493_v33  ;;  %1496 = vrcp.f32 %v1934_v49  ;;  %v549_v60 = vand.u32 2147483648, %v1918_v30 }
 0x13b   :  { %v420_v46 = vsub.f32 1.0, %v419_v38  ;;  %688 = vmatmul.f32.vlgmr.msra.gmra.mxu3 %v522_v41  ;;  %v417_v47 = vmul.f32 %v416_v44, %v1827_v58  ;;  %v442_v58 = vand.u32 2147483647, %v1886_v39  ;;  %vm425_vm3 = vmor %vm423_vm2, %vm424_vm0  ;;  %v437_v18 = vadd.f32 %v1900_v63, %v436_v56 }
 0x13c   :  { %v547_v2 = vand.u32 2147483647, %v1918_v30  ;;  %vm543_vm8 = vweird.f32 %v1918_v30  ;;  %v445_v1 = vor.u32 1.1754944e-38, %v444_v61  ;;  %v550_v27 = vor.u32 1.1754944e-38, %v549_v60 }
 0x13d   :  { %v421_v37 = vmul.f32 %v1493_v33, %v420_v46  ;;  %667 = vmatmul.f32.gmra.mxu1 %v417_v47  ;;  %v441_v25 = vsel %vm440_vm7, %v1900_v63, %v437_v18  ;;  %vm443_vm10 = vcmp.eq.f32.partialorder %v442_v58, 8.507059e+37  ;;  %vm559_vm11 = vweird.f32 %v1916_v29 }
 0x13e   :  { %v1495_v55 = vpop.eup %1494  ;;  %vm548_vm12 = vcmp.eq.f32.partialorder %v547_v2, 8.507059e+37  ;;  %v446_v39 = vsel %vm443_vm10, %v445_v1, %v441_v25  ;;  %v557_v0 = vadd.f32 %v1916_v29, %v556_v21  ;;  %vm558_vm13 = vweird.f32 %v1896_v52 }
 0x13f   :  { %v539_v57 = vmul.f32 %v1495_v55, %v1918_v30  ;;  %v422_v59 = vadd.f32 %v1493_v33, %v421_v37  ;;  %vm544_vm6 = vweird.f32 %v1495_v55  ;;  %v564_v30 = vand.u32 2147483648, %v1896_v52  ;;  %vm560_vm14 = vmor %vm558_vm13, %vm559_vm11 }
 0x140   :  { %vm545_vm9 = vmor %vm543_vm8, %vm544_vm6  ;;  %v562_v35 = vand.u32 2147483647, %v1896_v52  ;;  %v447_v36 = vmul.f32 %v446_v39, %v1843_v13  ;;  %v561_v42 = vsel %vm560_vm14, %v1916_v29, %v557_v0  ;;  %v487_v21 = vand.u32 2147483647, %v1934_v49 }
 0x141   :  { %v540_v5 = vsub.f32 1.0, %v539_v57  ;;  %v1947_v19 = vpop.permute.xlu1 %330  ;;  %v426_v4 = vsel %vm425_vm3, %v1493_v33, %v422_v59  ;;  %v1960_v8 = vpop.permute.xlu2 %380  ;;  %v565_v43 = vor.u32 1.1754944e-38, %v564_v30  ;;  %v489_v30 = vand.u32 2147483648, %v1934_v49 }
 0x142   :  { %1498 = vrcp.f32 %v1947_v19  ;;  %v431_v16 = vsel %vm428_vm5, %v430_v6, %v426_v4  ;;  %vm563_vm15 = vcmp.eq.f32.partialorder %v562_v35, 8.507059e+37  ;;  %v457_v13 = vand.u32 2147483647, %v1947_v19 }
 0x143   :  { %v541_v3 = vmul.f32 %v1495_v55, %v540_v5  ;;  %691 = vmatmul.f32.gmra.mxu3 %v537_v12  ;;  %v432_v23 = vmul.f32 %v431_v16, %v1835_v62  ;;  %v1963_v62 = vpop.eup %1496  ;;  %1500 = vrcp.f32 %v1960_v8  ;;  %v566_v44 = vsel %vm563_vm15, %v565_v43, %v561_v42 }
 0x144   :  { %v479_v38 = vmul.f32 %v1963_v62, %v1934_v49  ;;  %vm453_vm1 = vweird.f32 %v1947_v19  ;;  %v567_v51 = vmul.f32 %v566_v44, %v1848_v15  ;;  %vm458_vm3 = vcmp.eq.f32.partialorder %v457_v13, 8.507059e+37 }
 0x145   :  { %670 = vmatmul.f32.gmra.mxu1 %v432_v23  ;;  %v542_v26 = vadd.f32 %v1495_v55, %v541_v3  ;;  %vm484_vm7 = vweird.f32 %v1963_v62  ;;  %vm483_vm13 = vweird.f32 %v1934_v49 }
 0x146   :  { %v480_v46 = vsub.f32 1.0, %v479_v38  ;;  %vm2021_vm14 = vmor %vm483_vm13, %vm484_vm7 }
 0x147   :  { %v546_v28 = vsel %vm545_vm9, %v1495_v55, %v542_v26 }
 0x148   :  { %v1499_v63 = vpop.eup %1498  ;;  %v551_v54 = vsel %vm548_vm12, %v550_v27, %v546_v28  ;;  %v481_v58 = vmul.f32 %v1963_v62, %v480_v46  ;;  %v607_v46 = vand.u32 2147483647, %v1960_v8 }
 0x149   :  { %v449_v31 = vmul.f32 %v1499_v63, %v1947_v19  ;;  %v1970_v32 = vpop.permute.xlu1 %370  ;;  %v1972_v33 = vpop.permute.xlu0 %335  ;;  %v552_v34 = vmul.f32 %v551_v54, %v1840_v7  ;;  %v459_v7 = vand.u32 2147483648, %v1947_v19  ;;  %vm454_vm0 = vweird.f32 %v1499_v63 }
 0x14a   :  { %1502 = vrcp.f32 %v1970_v32  ;;  %v1986_v45 = vpop.eup %1500  ;;  %vm455_vm2 = vmor %vm453_vm1, %vm454_vm0  ;;  %v579_v6 = vand.u32 2147483648, %v1970_v32  ;;  %v474_v18 = vand.u32 2147483648, %v1972_v33  ;;  %v577_v5 = vand.u32 2147483647, %v1970_v32 }
 0x14b   :  { %v450_v41 = vsub.f32 1.0, %v449_v31  ;;  %1504 = vrcp.f32 %v1972_v33  ;;  %694 = vmatmul.f32.gmra.mxu3 %v552_v34  ;;  %v460_v56 = vor.u32 1.1754944e-38, %v459_v7  ;;  %v599_v61 = vmul.f32 %v1986_v45, %v1960_v8 }
 0x14c   :  { %v472_v4 = vand.u32 2147483647, %v1972_v33  ;;  %vm573_vm6 = vweird.f32 %v1970_v32  ;;  %v482_v16 = vadd.f32 %v1963_v62, %v481_v58  ;;  %vm468_vm8 = vweird.f32 %v1972_v33 }
 0x14d   :  { %v451_v52 = vmul.f32 %v1499_v63, %v450_v41  ;;  %673 = vmatmul.f32.gmra.mxu1 %v447_v36  ;;  %v600_v3 = vsub.f32 1.0, %v599_v61  ;;  %v580_v2 = vor.u32 1.1754944e-38, %v579_v6  ;;  %v475_v1 = vor.u32 1.1754944e-38, %v474_v18 }
 0x14e   :  { %vm578_vm11 = vcmp.eq.f32.partialorder %v577_v5, 8.507059e+37  ;;  %vm473_vm12 = vcmp.eq.f32.partialorder %v472_v4, 8.507059e+37  ;;  %vm488_vm0 = vcmp.eq.f32.partialorder %v487_v21, 8.507059e+37  ;;  %v490_v36 = vor.u32 1.1754944e-38, %v489_v30 }
 0x14f   :  { %v452_v47 = vadd.f32 %v1499_v63, %v451_v52  ;;  %v601_v31 = vmul.f32 %v1986_v45, %v600_v3  ;;  %v609_v41 = vand.u32 2147483648, %v1960_v8 }
 0x150   :  { %v1503_v48 = vpop.eup %1502 }
 0x151   :  { %v1505_v29 = vpop.eup %1504  ;;  %v569_v50 = vmul.f32 %v1503_v48, %v1970_v32  ;;  %v1990_v37 = vpop.permute.xlu0 %375  ;;  %v456_v53 = vsel %vm455_vm2, %v1499_v63, %v452_v47  ;;  %vm574_vm4 = vweird.f32 %v1503_v48  ;;  %v602_v7 = vadd.f32 %v1986_v45, %v601_v31 }
 0x152   :  { %v464_v55 = vmul.f32 %v1505_v29, %v1972_v33  ;;  %1506 = vrcp.f32 %v1990_v37  ;;  %v461_v40 = vsel %vm458_vm3, %v460_v56, %v456_v53  ;;  %vm469_vm5 = vweird.f32 %v1505_v29  ;;  %vm575_vm9 = vmor %vm573_vm6, %vm574_vm4 }
 0x153   :  { %v570_v57 = vsub.f32 1.0, %v569_v50  ;;  %697 = vmatmul.f32.gmra.mxu3 %v567_v51  ;;  %v462_v59 = vmul.f32 %v461_v40, %v1851_v17  ;;  %vm470_vm10 = vmor %vm468_vm8, %vm469_vm5  ;;  %v594_v33 = vand.u32 2147483648, %v1990_v37  ;;  %vm588_vm1 = vweird.f32 %v1990_v37 }
 0x154   :  { %v465_v12 = vsub.f32 1.0, %v464_v55  ;;  %vm604_vm3 = vweird.f32 %v1986_v45  ;;  %vm603_vm5 = vweird.f32 %v1960_v8  ;;  %v610_v53 = vor.u32 1.1754944e-38, %v609_v41 }
 0x155   :  { %v571_v15 = vmul.f32 %v1503_v48, %v570_v57  ;;  %676 = vmatmul.f32.gmra.mxu1 %v462_v59  ;;  %v595_v43 = vor.u32 1.1754944e-38, %v594_v33  ;;  %vm2037_vm6 = vmor %vm603_vm5, %vm604_vm3  ;;  %vm608_vm8 = vcmp.eq.f32.partialorder %v607_v46, 8.507059e+37 }
 0x156   :  { %v466_v19 = vmul.f32 %v1505_v29, %v465_v12 }
 0x157   :  { %v572_v17 = vadd.f32 %v1503_v48, %v571_v15 }
 0x158   :  { %v1507_v60 = vpop.eup %1506  ;;  %v467_v23 = vadd.f32 %v1505_v29, %v466_v19 }
 0x159   :  { %v584_v25 = vmul.f32 %v1507_v60, %v1990_v37  ;;  %v2009_v26 = vpop.permute.xlu1 %345  ;;  %v576_v27 = vsel %vm575_vm9, %v1503_v48, %v572_v17  ;;  %vm589_vm15 = vweird.f32 %v1507_v60 }
 0x15a   :  { %1508 = vrcp.f32 %v2009_v26  ;;  %v471_v28 = vsel %vm470_vm10, %v1505_v29, %v467_v23  ;;  %v581_v39 = vsel %vm578_vm11, %v580_v2, %v576_v27  ;;  %vm590_vm2 = vmor %vm588_vm1, %vm589_vm15  ;;  %v504_v50 = vand.u32 2147483648, %v2009_v26 }
 0x15b   :  { %v585_v0 = vsub.f32 1.0, %v584_v25  ;;  %v476_v63 = vsel %vm473_vm12, %v475_v1, %v471_v28  ;;  %v582_v54 = vmul.f32 %v581_v39, %v1856_v14  ;;  %v592_v14 = vand.u32 2147483647, %v1990_v37 }
 0x15c   :  { %v477_v32 = vmul.f32 %v476_v63, %v1859_v20  ;;  %v486_v20 = vsel %vm2021_vm14, %v1963_v62, %v482_v16  ;;  %v606_v37 = vsel %vm2037_vm6, %v1986_v45, %v602_v7  ;;  %v502_v8 = vand.u32 2147483647, %v2009_v26 }
 0x15d   :  { %v586_v34 = vmul.f32 %v1507_v60, %v585_v0  ;;  %700 = vmatmul.f32.gmra.mxu3 %v582_v54  ;;  %v491_v13 = vsel %vm488_vm0, %v490_v36, %v486_v20  ;;  %vm593_vm4 = vcmp.eq.f32.partialorder %v592_v14, 8.507059e+37  ;;  %vm498_vm9 = vweird.f32 %v2009_v26 }
 0x15e   :  { %679 = vmatmul.f32.gmra.mxu1 %v477_v32  ;;  %v492_v29 = vmul.f32 %v491_v13, %v1867_v22  ;;  %v611_v22 = vsel %vm608_vm8, %v610_v53, %v606_v37  ;;  %v505_v58 = vor.u32 1.1754944e-38, %v504_v50  ;;  %vm503_vm11 = vcmp.eq.f32.partialorder %v502_v8, 8.507059e+37 }
 0x15f   :  { %v386_v49 = vpop.permute.xlu0 %385  ;;  %v587_v38 = vadd.f32 %v1507_v60, %v586_v34  ;;  %v612_v61 = vmul.f32 %v611_v22, %v1872_v10  ;;  %v2054_v10 = vld [vmem:[%s2479_s3] ss:$0 sm:$0xff]  ;;  %s1710_s3 = smov [#allocation9]  }
 0x160   :  { %v1509_v42 = vpop.eup %1508  ;;  %1510 = vrcp.f32 %v386_v49  ;;  %v624_v12 = vand.u32 2147483648, %v386_v49  ;;  %v622_v18 = vand.u32 2147483647, %v386_v49  ;;  %vm618_vm13 = vweird.f32 %v386_v49  ;;  %s1404_s9 = sshll.u32 %s1710_s3, 4  ;;  %s1405_s9 = int_to_ptr.vmem [resolvable:$true] %s1404_s9 }
 0x161   :  { %v494_v52 = vmul.f32 %v1509_v42, %v2009_v26  ;;  %v591_v62 = vsel %vm590_vm2, %v1507_v60, %v587_v38  ;;  %vm499_vm7 = vweird.f32 %v1509_v42 }
 0x162   :  { %v596_v44 = vsel %vm593_vm4, %v595_v43, %v591_v62  ;;  %vm500_vm10 = vmor %vm498_vm9, %vm499_vm7  ;;  %v625_v19 = vor.u32 1.1754944e-38, %v624_v12  ;;  %vm623_vm15 = vcmp.eq.f32.partialorder %v622_v18, 8.507059e+37 }
 0x163   :  { %v495_v47 = vsub.f32 1.0, %v494_v52  ;;  %v597_v48 = vmul.f32 %v596_v44, %v1864_v11 }
 0x165   :  { %v496_v51 = vmul.f32 %v1509_v42, %v495_v47  ;;  %703 = vmatmul.f32.gmra.mxu3 %v597_v48 }
 0x166   :  { %v1511_v55 = vpop.eup %1510  ;;  %682 = vmatmul.f32.gmra.mxu1 %v492_v29 }
 0x167   :  { %v614_v11 = vmul.f32 %v1511_v55, %v386_v49  ;;  %v497_v40 = vadd.f32 %v1509_v42, %v496_v51  ;;  %vm619_vm12 = vweird.f32 %v1511_v55 }
 0x168   :  { %vm620_vm14 = vmor %vm618_vm13, %vm619_vm12 }
 0x169   :  { %v615_v57 = vsub.f32 1.0, %v614_v11  ;;  %v501_v59 = vsel %vm500_vm10, %v1509_v42, %v497_v40 }
 0x16a   :  { %v506_v45 = vsel %vm503_vm11, %v505_v58, %v501_v59 }
 0x16b   :  { %v616_v6 = vmul.f32 %v1511_v55, %v615_v57  ;;  %v507_v15 = vmul.f32 %v506_v45, %v1875_v24 }
 0x16d   :  { %706 = vmatmul.f32.gmra.mxu3 %v612_v61  ;;  %v617_v5 = vadd.f32 %v1511_v55, %v616_v6 }
 0x16e   :  { %685 = vmatmul.f32.gmra.mxu1 %v507_v15 }
 0x16f   :  { %v621_v4 = vsel %vm620_vm14, %v1511_v55, %v617_v5 }
 0x170   :  { %v626_v21 = vsel %vm623_vm15, %v625_v19, %v621_v4 }
 0x171   :  { %v627_v17 = vmul.f32 %v626_v21, %v1880_v9 }
 0x175   :  { %709 = vmatmul.f32.gmra.mxu3 %v627_v17 }
 0x1b2   :  { %v665_v24 = vpop.f32.mrf.mxu1 }
 0x1b3   :  { %v666_v16 = vadd.f32 %v2054_v10, %v665_v24 }
 0x1b5   :  { %v2057_v60 = vmax.f32 %v666_v16, 0.0 }
 0x1b7   :  { %v729_v3 = vmul.f32 %v2057_v60, %v2057_v60 }
 0x1b9   :  { %745 = vadd.xlane.f32.xlu1 %v729_v3 }
 0x1ba   :  { %v668_v23 = vpop.f32.mrf.mxu1 }
 0x1bb   :  { %v669_v2 = vadd.f32 %v2054_v10, %v668_v23 }
 0x1bd   :  { %v2062_v25 = vmax.f32 %v669_v2, 0.0 }
 0x1be   :  { %v689_v9 = vpop.f32.mrf.mxu3 }
 0x1bf   :  { %v730_v26 = vmul.f32 %v2062_v25, %v2062_v25  ;;  %v690_v41 = vadd.f32 %v2054_v10, %v689_v9 }
 0x1c1   :  { %747 = vadd.xlane.f32.xlu2 %v730_v26  ;;  %v2087_v52 = vmax.f32 %v690_v41, 0.0 }
 0x1c2   :  { %v671_v1 = vpop.f32.mrf.mxu1 }
 0x1c3   :  { %v672_v27 = vadd.f32 %v2054_v10, %v671_v1  ;;  %v737_v48 = vmul.f32 %v2087_v52, %v2087_v52 }
 0x1c5   :  { %v2067_v28 = vmax.f32 %v672_v27, 0.0 }
 0x1c6   :  { %v692_v39 = vpop.f32.mrf.mxu3 }
 0x1c7   :  { %v731_v0 = vmul.f32 %v2067_v28, %v2067_v28  ;;  %v693_v44 = vadd.f32 %v2054_v10, %v692_v39 }
 0x1c9   :  { %749 = vadd.xlane.f32.xlu0 %v731_v0  ;;  %v2098_v50 = vmax.f32 %v693_v44, 0.0 }
 0x1ca   :  { %v674_v63 = vpop.f32.mrf.mxu1 }
 0x1cb   :  { %v675_v54 = vadd.f32 %v2054_v10, %v674_v63  ;;  %v738_v40 = vmul.f32 %v2098_v50, %v2098_v50 }
 0x1cd   :  { %v2072_v30 = vmax.f32 %v675_v54, 0.0 }
 0x1ce   :  { %v695_v31 = vpop.f32.mrf.mxu3 }
 0x1cf   :  { %v732_v32 = vmul.f32 %v2072_v30, %v2072_v30  ;;  %v696_v58 = vadd.f32 %v2054_v10, %v695_v31 }
 0x1d1   :  { %751 = vadd.xlane.f32.xlu2 %v732_v32  ;;  %v2118_v61 = vmax.f32 %v696_v58, 0.0 }
 0x1d2   :  { %v677_v33 = vpop.f32.mrf.mxu1 }
 0x1d3   :  { %v678_v34 = vadd.f32 %v2054_v10, %v677_v33  ;;  %v739_v19 = vmul.f32 %v2118_v61, %v2118_v61 }
 0x1d5   :  { %v2077_v35 = vmax.f32 %v678_v34, 0.0 }
 0x1d6   :  { %v698_v20 = vpop.f32.mrf.mxu3 }
 0x1d7   :  { %v733_v14 = vmul.f32 %v2077_v35, %v2077_v35  ;;  %v699_v46 = vadd.f32 %v2054_v10, %v698_v20 }
 0x1d9   :  { %753 = vadd.xlane.f32.xlu1 %v733_v14  ;;  %v2100_v37 = vmax.f32 %v699_v46, 0.0 }
 0x1db   :  { %v680_v49 = vpop.f32.mrf.mxu1  ;;  %v740_v11 = vmul.f32 %v2100_v37, %v2100_v37 }
 0x1dc   :  { %v681_v36 = vadd.f32 %v2054_v10, %v680_v49 }
 0x1de   :  { %v2082_v38 = vmax.f32 %v681_v36, 0.0 }
 0x1e0   :  { %v701_v42 = vpop.f32.mrf.mxu3  ;;  %v734_v43 = vmul.f32 %v2082_v38, %v2082_v38 }
 0x1e1   :  { %v702_v53 = vadd.f32 %v2054_v10, %v701_v42 }
 0x1e2   :  { %755 = vadd.xlane.f32.xlu2 %v734_v43 }
 0x1e3   :  { %v683_v7 = vpop.f32.mrf.mxu1  ;;  %v2114_v59 = vmax.f32 %v702_v53, 0.0 }
 0x1e4   :  { %v684_v13 = vadd.f32 %v2054_v10, %v683_v7 }
 0x1e5   :  { %v741_v6 = vmul.f32 %v2114_v59, %v2114_v59 }
 0x1e6   :  { %v2090_v62 = vmax.f32 %v684_v13, 0.0 }
 0x1e8   :  { %v704_v47 = vpop.f32.mrf.mxu3  ;;  %v735_v56 = vmul.f32 %v2090_v62, %v2090_v62 }
 0x1e9   :  { %v705_v18 = vadd.f32 %v2054_v10, %v704_v47 }
 0x1ea   :  { %761 = vadd.xlane.f32.xlu2 %v737_v48  ;;  %757 = vadd.xlane.f32.xlu0 %v735_v56 }
 0x1eb   :  { %v686_v29 = vpop.f32.mrf.mxu1  ;;  %v2130_v21 = vmax.f32 %v705_v18, 0.0 }
 0x1ec   :  { %v687_v51 = vadd.f32 %v2054_v10, %v686_v29 }
 0x1ed   :  { %v742_v24 = vmul.f32 %v2130_v21, %v2130_v21 }
 0x1ee   :  { %v2103_v8 = vmax.f32 %v687_v51, 0.0 }
 0x1f0   :  { %v707_v55 = vpop.f32.mrf.mxu3  ;;  %v736_v22 = vmul.f32 %v2103_v8, %v2103_v8 }
 0x1f1   :  { %v708_v57 = vadd.f32 %v2054_v10, %v707_v55 }
 0x1f2   :  { %767 = vadd.xlane.f32.xlu2 %v740_v11  ;;  %763 = vadd.xlane.f32.xlu0 %v738_v40 }
 0x1f3   :  { %759 = vadd.xlane.f32.xlu1 %v736_v22  ;;  %v2116_v45 = vmax.f32 %v708_v57, 0.0 }
 0x1f5   :  { %v743_v15 = vmul.f32 %v2116_v45, %v2116_v45 }
 0x1f8   :  { %v710_v12 = vpop.f32.mrf.mxu3 }
 0x1f9   :  { %v711_v5 = vadd.f32 %v2054_v10, %v710_v12 }
 0x1fa   :  { %769 = vadd.xlane.f32.xlu0 %v741_v6  ;;  %773 = vadd.xlane.f32.xlu2 %v743_v15 }
 0x1fb   :  { %765 = vadd.xlane.f32.xlu1 %v739_v19  ;;  %v2128_v4 = vmax.f32 %v711_v5, 0.0 }
 0x1fd   :  { %v744_v17 = vmul.f32 %v2128_v4, %v2128_v4 }
 0x202   :  { %775 = vadd.xlane.f32.xlu0 %v744_v17 }
 0x203   :  { %771 = vadd.xlane.f32.xlu1 %v742_v24 }
 0x22c   :  { %v746_v16 = vpop.xlane.xlu1 %745 }
 0x22d   :  { %1512 = vrsqrt.f32 %v746_v16  ;;  %vm784_vm0 = vcmp.eq.f32.partialorder %v746_v16, inf  ;;  %v787_v31 = vand.u32 2147483648, %v746_v16  ;;  %vm786_vm1 = vcmp.eq.f32.partialorder %v746_v16, 0.0 }
 0x233   :  { %v1513_v10 = vpop.eup %1512 }
 0x234   :  { %v778_v3 = vmul.f32 %v1513_v10, %v746_v16  ;;  %v748_v23 = vpop.xlane.xlu2 %747 }
 0x235   :  { %1514 = vrsqrt.f32 %v748_v23  ;;  %vm796_vm2 = vcmp.eq.f32.partialorder %v748_v23, inf  ;;  %v799_v13 = vand.u32 2147483648, %v748_v23  ;;  %vm798_vm3 = vcmp.eq.f32.partialorder %v748_v23, 0.0 }
 0x236   :  { %v779_v2 = vmul.f32 %v1513_v10, %v778_v3 }
 0x238   :  { %v780_v9 = vmul.f32 0.5, %v779_v2 }
 0x23a   :  { %v781_v26 = vsub.f32 1.5, %v780_v9 }
 0x23b   :  { %v1515_v1 = vpop.eup %1514 }
 0x23c   :  { %v782_v27 = vmul.f32 %v1513_v10, %v781_v26  ;;  %v790_v39 = vmul.f32 %v1515_v1, %v748_v23  ;;  %v750_v0 = vpop.xlane.xlu0 %749 }
 0x23d   :  { %1516 = vrsqrt.f32 %v750_v0  ;;  %vm808_vm6 = vcmp.eq.f32.partialorder %v750_v0, inf  ;;  %v811_v19 = vand.u32 2147483648, %v750_v0  ;;  %vm810_vm8 = vcmp.eq.f32.partialorder %v750_v0, 0.0 }
 0x23e   :  { %v783_v63 = vmul.f32 %v782_v27, %v746_v16  ;;  %v791_v54 = vmul.f32 %v1515_v1, %v790_v39 }
 0x240   :  { %v785_v32 = vsel %vm784_vm0, %v746_v16, %v783_v63  ;;  %v792_v33 = vmul.f32 0.5, %v791_v54 }
 0x241   :  { %v788_v34 = vsel %vm786_vm1, %v787_v31, %v785_v32 }
 0x242   :  { %v969_v14 = vadd.f32 1e-07, %v788_v34  ;;  %v793_v20 = vsub.f32 1.5, %v792_v33 }
 0x243   :  { %v1517_v49 = vpop.eup %1516 }
 0x244   :  { %1518 = vrcp.f32 %v969_v14  ;;  %v2136_v36 = vpop.xlane.xlu2 %751  ;;  %v794_v41 = vmul.f32 %v1515_v1, %v793_v20  ;;  %v802_v42 = vmul.f32 %v1517_v49, %v750_v0  ;;  %v996_v22 = vand.u32 2147483648, %v969_v14 }
 0x245   :  { %1520 = vrsqrt.f32 %v2136_v36  ;;  %v994_v6 = vand.u32 2147483647, %v969_v14  ;;  %vm990_vm5 = vweird.f32 %v969_v14  ;;  %vm820_vm10 = vcmp.eq.f32.partialorder %v2136_v36, inf }
 0x246   :  { %v795_v43 = vmul.f32 %v794_v41, %v748_v23  ;;  %v803_v7 = vmul.f32 %v1517_v49, %v802_v42  ;;  %v997_v17 = vor.u32 1.1754944e-38, %v996_v22  ;;  %vm822_vm12 = vcmp.eq.f32.partialorder %v2136_v36, 0.0 }
 0x247   :  { %vm995_vm9 = vcmp.eq.f32.partialorder %v994_v6, 8.507059e+37 }
 0x248   :  { %v797_v44 = vsel %vm796_vm2, %v748_v23, %v795_v43  ;;  %v804_v46 = vmul.f32 0.5, %v803_v7 }
 0x249   :  { %v800_v48 = vsel %vm798_vm3, %v799_v13, %v797_v44 }
 0x24a   :  { %v1519_v47 = vpop.eup %1518  ;;  %v970_v51 = vadd.f32 1e-07, %v800_v48  ;;  %v805_v53 = vsub.f32 1.5, %v804_v46 }
 0x24b   :  { %v1521_v56 = vpop.eup %1520  ;;  %v986_v29 = vmul.f32 %v1519_v47, %v969_v14  ;;  %vm991_vm4 = vweird.f32 %v1519_v47  ;;  %v823_v14 = vand.u32 2147483648, %v2136_v36 }
 0x24c   :  { %v814_v55 = vmul.f32 %v1521_v56, %v2136_v36  ;;  %v2140_v11 = vpop.xlane.xlu1 %753  ;;  %1522 = vrcp.f32 %v970_v51  ;;  %v806_v58 = vmul.f32 %v1517_v49, %v805_v53  ;;  %vm992_vm7 = vmor %vm990_vm5, %vm991_vm4  ;;  %vm1005_vm13 = vweird.f32 %v970_v51 }
 0x24d   :  { %v987_v40 = vsub.f32 1.0, %v986_v29  ;;  %1524 = vrsqrt.f32 %v2140_v11  ;;  %vm832_vm1 = vcmp.eq.f32.partialorder %v2140_v11, inf  ;;  %vm834_vm2 = vcmp.eq.f32.partialorder %v2140_v11, 0.0 }
 0x24e   :  { %v815_v57 = vmul.f32 %v1521_v56, %v814_v55  ;;  %v807_v15 = vmul.f32 %v806_v58, %v750_v0 }
 0x24f   :  { %v988_v12 = vmul.f32 %v1519_v47, %v987_v40 }
 0x250   :  { %v816_v18 = vmul.f32 0.5, %v815_v57  ;;  %v809_v24 = vsel %vm808_vm6, %v750_v0, %v807_v15  ;;  %v1011_v0 = vand.u32 2147483648, %v970_v51 }
 0x251   :  { %v989_v5 = vadd.f32 %v1519_v47, %v988_v12  ;;  %v812_v23 = vsel %vm810_vm8, %v811_v19, %v809_v24 }
 0x252   :  { %v817_v16 = vsub.f32 1.5, %v816_v18  ;;  %v1523_v10 = vpop.eup %1522  ;;  %v971_v1 = vadd.f32 1e-07, %v812_v23  ;;  %v1012_v43 = vor.u32 1.1754944e-38, %v1011_v0 }
 0x253   :  { %v993_v3 = vsel %vm992_vm7, %v1519_v47, %v989_v5  ;;  %v1525_v2 = vpop.eup %1524  ;;  %v1001_v26 = vmul.f32 %v1523_v10, %v970_v51  ;;  %vm1006_vm11 = vweird.f32 %v1523_v10 }
 0x254   :  { %v998_v9 = vsel %vm995_vm9, %v997_v17, %v993_v3  ;;  %v818_v39 = vmul.f32 %v1521_v56, %v817_v16  ;;  %v826_v63 = vmul.f32 %v1525_v2, %v2140_v11  ;;  %1526 = vrcp.f32 %v971_v1  ;;  %vm1007_vm14 = vmor %vm1005_vm13, %vm1006_vm11 }
 0x255   :  { %v2144_v27 = vmul.f32 %v998_v9, %v2057_v60  ;;  %v2147_v54 = vpop.xlane.xlu2 %755  ;;  %v1002_v31 = vsub.f32 1.0, %v1001_v26  ;;  %v1009_v60 = vand.u32 2147483647, %v970_v51  ;;  %v1024_v22 = vand.u32 2147483647, %v971_v1 }
 0x256   :  { %v819_v32 = vmul.f32 %v818_v39, %v2136_v36  ;;  %v827_v33 = vmul.f32 %v1525_v2, %v826_v63  ;;  %1528 = vrsqrt.f32 %v2147_v54  ;;  %v1026_v58 = vand.u32 2147483648, %v971_v1 }
 0x257   :  { %1225 = vst [vmem:[#allocation9] sm:$0xff] %v2144_v27  ;;  %v1003_v34 = vmul.f32 %v1523_v10, %v1002_v31  ;;  %vm1010_vm15 = vcmp.eq.f32.partialorder %v1009_v60, 8.507059e+37  ;;  %vm1020_vm3 = vweird.f32 %v971_v1  ;;  %vm1025_vm5 = vcmp.eq.f32.partialorder %v1024_v22, 8.507059e+37 }
 0x258   :  { %v821_v20 = vsel %vm820_vm10, %v2136_v36, %v819_v32  ;;  %v828_v49 = vmul.f32 0.5, %v827_v33  ;;  %v1027_v17 = vor.u32 1.1754944e-38, %v1026_v58  ;;  %vm844_vm6 = vcmp.eq.f32.partialorder %v2147_v54, inf }
 0x259   :  { %v1004_v41 = vadd.f32 %v1523_v10, %v1003_v34  ;;  %v824_v42 = vsel %vm822_vm12, %v823_v14, %v821_v20  ;;  %vm846_vm9 = vcmp.eq.f32.partialorder %v2147_v54, 0.0 }
 0x25a   :  { %v2156_v7 = vadd.f32 1e-07, %v824_v42  ;;  %v829_v13 = vsub.f32 1.5, %v828_v49  ;;  %v1527_v44 = vpop.eup %1526 }
 0x25b   :  { %v1008_v46 = vsel %vm1007_vm14, %v1523_v10, %v1004_v41  ;;  %v1016_v56 = vmul.f32 %v1527_v44, %v971_v1  ;;  %vm1021_vm0 = vweird.f32 %v1527_v44 }
 0x25c   :  { %v1529_v47 = vpop.eup %1528  ;;  %v1013_v48 = vsel %vm1010_vm15, %v1012_v43, %v1008_v46  ;;  %1530 = vrcp.f32 %v2156_v7  ;;  %v830_v55 = vmul.f32 %v1525_v2, %v829_v13  ;;  %vm1022_vm4 = vmor %vm1020_vm3, %vm1021_vm0  ;;  %v1039_v23 = vand.u32 2147483647, %v2156_v7 }
 0x25d   :  { %v2159_v29 = vpop.xlane.xlu0 %757  ;;  %v2162_v36 = vmul.f32 %v1013_v48, %v2062_v25  ;;  %v2164_v51 = vpop.xlane.xlu2 %761  ;;  %v1017_v53 = vsub.f32 1.0, %v1016_v56  ;;  %v838_v40 = vmul.f32 %v1529_v47, %v2147_v54  ;;  %v835_v25 = vand.u32 2147483648, %v2140_v11 }
 0x25e   :  { %1532 = vrsqrt.f32 %v2159_v29  ;;  %v831_v12 = vmul.f32 %v830_v55, %v2140_v11  ;;  %v1041_v31 = vand.u32 2147483648, %v2156_v7  ;;  %vm1035_vm8 = vweird.f32 %v2156_v7 }
 0x25f   :  { %1226 = vst [vmem:[#allocation9 + $0x8] sm:$0xff] %v2162_v36  ;;  %v1018_v57 = vmul.f32 %v1527_v44, %v1017_v53  ;;  %v839_v6 = vmul.f32 %v1529_v47, %v838_v40  ;;  %1534 = vrsqrt.f32 %v2164_v51  ;;  %vm1040_vm10 = vcmp.eq.f32.partialorder %v1039_v23, 8.507059e+37 }
 0x260   :  { %v833_v5 = vsel %vm832_vm1, %v2140_v11, %v831_v12  ;;  %v1042_v42 = vor.u32 1.1754944e-38, %v1041_v31  ;;  %vm856_vm12 = vcmp.eq.f32.partialorder %v2159_v29, inf  ;;  %vm858_vm13 = vcmp.eq.f32.partialorder %v2159_v29, 0.0 }
 0x261   :  { %v1019_v18 = vadd.f32 %v1527_v44, %v1018_v57  ;;  %v840_v19 = vmul.f32 0.5, %v839_v6  ;;  %v836_v16 = vsel %vm834_vm2, %v835_v25, %v833_v5  ;;  %v859_v57 = vand.u32 2147483648, %v2159_v29 }
 0x262   :  { %v1531_v15 = vpop.eup %1530  ;;  %v2177_v2 = vadd.f32 1e-07, %v836_v16  ;;  %vm880_vm14 = vcmp.eq.f32.partialorder %v2164_v51, inf  ;;  %vm882_vm15 = vcmp.eq.f32.partialorder %v2164_v51, 0.0 }
 0x263   :  { %v1031_v24 = vmul.f32 %v1531_v15, %v2156_v7  ;;  %v1023_v3 = vsel %vm1022_vm4, %v1527_v44, %v1019_v18  ;;  %v841_v9 = vsub.f32 1.5, %v840_v19  ;;  %vm1036_vm7 = vweird.f32 %v1531_v15 }
 0x264   :  { %v1533_v10 = vpop.eup %1532  ;;  %v1028_v39 = vsel %vm1025_vm5, %v1027_v17, %v1023_v3  ;;  %vm1037_vm11 = vmor %vm1035_vm8, %vm1036_vm7  ;;  %v1054_v18 = vand.u32 2147483647, %v2177_v2  ;;  %v1056_v5 = vand.u32 2147483648, %v2177_v2  ;;  %vm1050_vm1 = vweird.f32 %v2177_v2 }
 0x265   :  { %v2179_v26 = vpop.xlane.xlu0 %763  ;;  %v1032_v1 = vsub.f32 1.0, %v1031_v24  ;;  %v850_v11 = vmul.f32 %v1533_v10, %v2159_v29  ;;  %v2184_v63 = vmul.f32 %v1028_v39, %v2067_v28  ;;  %v1535_v0 = vpop.eup %1534  ;;  %v842_v33 = vmul.f32 %v1529_v47, %v841_v9 }
 0x266   :  { %1536 = vrsqrt.f32 %v2179_v26  ;;  %v2189_v60 = vpop.xlane.xlu2 %767  ;;  %v847_v28 = vand.u32 2147483648, %v2147_v54  ;;  %v874_v14 = vmul.f32 %v1535_v0, %v2164_v51  ;;  %v883_v9 = vand.u32 2147483648, %v2164_v51 }
 0x267   :  { %1538 = vrcp.f32 %v2177_v2  ;;  %v1033_v32 = vmul.f32 %v1531_v15, %v1032_v1  ;;  %v851_v34 = vmul.f32 %v1533_v10, %v850_v11  ;;  %1227 = vst [vmem:[#allocation9 + $0x10] sm:$0xff] %v2184_v63  ;;  %v843_v49 = vmul.f32 %v842_v33, %v2147_v54 }
 0x268   :  { %v875_v43 = vmul.f32 %v1535_v0, %v874_v14  ;;  %1540 = vrsqrt.f32 %v2189_v60  ;;  %vm1055_vm3 = vcmp.eq.f32.partialorder %v1054_v18, 8.507059e+37  ;;  %vm892_vm4 = vcmp.eq.f32.partialorder %v2179_v26, inf }
 0x269   :  { %v1034_v20 = vadd.f32 %v1531_v15, %v1033_v32  ;;  %v852_v41 = vmul.f32 0.5, %v851_v34  ;;  %v845_v44 = vsel %vm844_vm6, %v2147_v54, %v843_v49  ;;  %vm894_vm5 = vcmp.eq.f32.partialorder %v2179_v26, 0.0 }
 0x26a   :  { %v848_v56 = vsel %vm846_vm9, %v847_v28, %v845_v44  ;;  %v876_v53 = vmul.f32 0.5, %v875_v43  ;;  %vm916_vm7 = vcmp.eq.f32.partialorder %v2189_v60, inf  ;;  %vm918_vm9 = vcmp.eq.f32.partialorder %v2189_v60, 0.0 }
 0x26b   :  { %v1038_v7 = vsel %vm1037_vm11, %v1531_v15, %v1034_v20  ;;  %v853_v46 = vsub.f32 1.5, %v852_v41  ;;  %v2210_v58 = vadd.f32 1e-07, %v848_v56  ;;  %v2214_v15 = vpop.xlane.xlu1 %759 }
 0x26c   :  { %v1537_v13 = vpop.eup %1536  ;;  %v1043_v48 = vsel %vm1040_vm10, %v1042_v42, %v1038_v7  ;;  %v877_v6 = vsub.f32 1.5, %v876_v53 }
 0x26d   :  { %v1539_v47 = vpop.eup %1538  ;;  %v886_v55 = vmul.f32 %v1537_v13, %v2179_v26  ;;  %v2207_v40 = vmul.f32 %v1043_v48, %v2072_v30  ;;  %v854_v12 = vmul.f32 %v1533_v10, %v853_v46  ;;  %1542 = vrcp.f32 %v2210_v58  ;;  %v2241_v41 = vpop.xlane.xlu0 %769 }
 0x26e   :  { %v1046_v22 = vmul.f32 %v1539_v47, %v2177_v2  ;;  %v1541_v30 = vpop.eup %1540  ;;  %v878_v17 = vmul.f32 %v1535_v0, %v877_v6  ;;  %vm1051_vm0 = vweird.f32 %v1539_v47  ;;  %1544 = vrsqrt.f32 %v2214_v15 }
 0x26f   :  { %v887_v25 = vmul.f32 %v1537_v13, %v886_v55  ;;  %1228 = vst [vmem:[#allocation9 + $0x18] sm:$0xff] %v2207_v40  ;;  %v855_v19 = vmul.f32 %v854_v12, %v2159_v29  ;;  %v910_v10 = vmul.f32 %v1541_v30, %v2189_v60  ;;  %vm1052_vm2 = vmor %vm1050_vm1, %vm1051_vm0  ;;  %v1057_v0 = vor.u32 1.1754944e-38, %v1056_v5 }
 0x270   :  { %v1047_v54 = vsub.f32 1.0, %v1046_v22  ;;  %v879_v23 = vmul.f32 %v878_v17, %v2164_v51  ;;  %v1071_v46 = vand.u32 2147483648, %v2210_v58  ;;  %v1069_v56 = vand.u32 2147483647, %v2210_v58 }
 0x271   :  { %v888_v24 = vmul.f32 0.5, %v887_v25  ;;  %v857_v3 = vsel %vm856_vm12, %v2159_v29, %v855_v19  ;;  %v911_v31 = vmul.f32 %v1541_v30, %v910_v10  ;;  %vm1065_vm8 = vweird.f32 %v2210_v58 }
 0x272   :  { %v1048_v16 = vmul.f32 %v1539_v47, %v1047_v54  ;;  %v860_v11 = vsel %vm858_vm13, %v859_v57, %v857_v3  ;;  %v881_v33 = vsel %vm880_vm14, %v2164_v51, %v879_v23  ;;  %v1072_v25 = vor.u32 1.1754944e-38, %v1071_v46 }
 0x273   :  { %v889_v39 = vsub.f32 1.5, %v888_v24  ;;  %v2232_v32 = vadd.f32 1e-07, %v860_v11  ;;  %v1543_v28 = vpop.eup %1542  ;;  %v884_v20 = vsel %vm882_vm15, %v883_v9, %v881_v33  ;;  %v912_v2 = vmul.f32 0.5, %v911_v31 }
 0x274   :  { %v1049_v1 = vadd.f32 %v1539_v47, %v1048_v16  ;;  %v1061_v29 = vmul.f32 %v1543_v28, %v2210_v58  ;;  %v2243_v42 = vpop.eup %1544  ;;  %v2250_v51 = vadd.f32 1e-07, %v884_v20  ;;  %vm1066_vm6 = vweird.f32 %v1543_v28 }
 0x275   :  { %v890_v34 = vmul.f32 %v1537_v13, %v889_v39  ;;  %1546 = vrcp.f32 %v2232_v32  ;;  %v913_v44 = vsub.f32 1.5, %v912_v2  ;;  %vm1067_vm10 = vmor %vm1065_vm8, %vm1066_vm6  ;;  %vm1070_vm11 = vcmp.eq.f32.partialorder %v1069_v56, 8.507059e+37 }
 0x276   :  { %v1053_v14 = vsel %vm1052_vm2, %v1539_v47, %v1049_v1  ;;  %v1062_v13 = vsub.f32 1.0, %v1061_v29  ;;  %v895_v47 = vand.u32 2147483648, %v2179_v26  ;;  %1548 = vrsqrt.f32 %v2241_v41 }
 0x277   :  { %v1058_v49 = vsel %vm1055_vm3, %v1057_v0, %v1053_v14  ;;  %v891_v7 = vmul.f32 %v890_v34, %v2179_v26  ;;  %1550 = vrcp.f32 %v2250_v51  ;;  %v914_v55 = vmul.f32 %v1541_v30, %v913_v44 }
 0x278   :  { %v2246_v43 = vmul.f32 %v1058_v49, %v2077_v35  ;;  %v862_v35 = vmul.f32 %v2243_v42, %v2214_v15  ;;  %v1063_v48 = vmul.f32 %v1543_v28, %v1062_v13  ;;  %v919_v30 = vand.u32 2147483648, %v2189_v60 }
 0x279   :  { %v893_v53 = vsel %vm892_vm4, %v2179_v26, %v891_v7  ;;  %v915_v19 = vmul.f32 %v914_v55, %v2189_v60  ;;  %v871_v16 = vand.u32 2147483648, %v2214_v15  ;;  %v1084_v23 = vand.u32 2147483647, %v2232_v32  ;;  %v2301_v7 = vpop.xlane.xlu2 %773 }
 0x27a   :  { %1229 = vst [vmem:[#allocation9 + $0x20] sm:$0xff] %v2246_v43  ;;  %v863_v22 = vmul.f32 %v2243_v42, %v862_v35  ;;  %v1064_v12 = vadd.f32 %v1543_v28, %v1063_v48  ;;  %v896_v6 = vsel %vm894_vm5, %v895_v47, %v893_v53  ;;  %v1086_v9 = vand.u32 2147483648, %v2232_v32  ;;  %v2309_v35 = vpop.xlane.xlu1 %765 }
 0x27b   :  { %v1547_v57 = vpop.eup %1546  ;;  %v2269_v18 = vadd.f32 1e-07, %v896_v6  ;;  %v917_v39 = vsel %vm916_vm7, %v2189_v60, %v915_v19  ;;  %vm868_vm12 = vcmp.eq.f32.partialorder %v2214_v15, inf  ;;  %vm870_vm14 = vcmp.eq.f32.partialorder %v2214_v15, 0.0 }
 0x27c   :  { %v1076_v54 = vmul.f32 %v1547_v57, %v2232_v32  ;;  %v1068_v5 = vsel %vm1067_vm10, %v1543_v28, %v1064_v12  ;;  %v864_v17 = vmul.f32 0.5, %v863_v22  ;;  %v2273_v24 = vpop.eup %1548  ;;  %vm1081_vm13 = vweird.f32 %v1547_v57 }
 0x27d   :  { %v1073_v58 = vsel %vm1070_vm11, %v1072_v25, %v1068_v5  ;;  %1552 = vrcp.f32 %v2269_v18  ;;  %v1551_v10 = vpop.eup %1550  ;;  %v920_v31 = vsel %vm918_vm9, %v919_v30, %v917_v39  ;;  %vm1080_vm15 = vweird.f32 %v2232_v32 }
 0x27e   :  { %v1077_v26 = vsub.f32 1.0, %v1076_v54  ;;  %v2278_v3 = vmul.f32 %v1073_v58, %v2082_v38  ;;  %v1106_v11 = vmul.f32 %v1551_v10, %v2250_v51  ;;  %v1114_v38 = vand.u32 2147483647, %v2250_v51  ;;  %vm1082_vm0 = vmor %vm1080_vm15, %vm1081_vm13 }
 0x27f   :  { %v2293_v0 = vadd.f32 1e-07, %v920_v31  ;;  %v865_v33 = vsub.f32 1.5, %v864_v17  ;;  %v1116_v14 = vand.u32 2147483648, %v2250_v51  ;;  %v922_v20 = vmul.f32 %v2273_v24, %v2241_v41 }
 0x280   :  { %v1078_v1 = vmul.f32 %v1547_v57, %v1077_v26  ;;  %1230 = vst [vmem:[#allocation9 + $0x28] sm:$0xff] %v2278_v3  ;;  %v1107_v28 = vsub.f32 1.0, %v1106_v11  ;;  %vm1085_vm1 = vcmp.eq.f32.partialorder %v1084_v23, 8.507059e+37  ;;  %v1087_v60 = vor.u32 1.1754944e-38, %v1086_v9 }
 0x281   :  { %vm1111_vm2 = vweird.f32 %v1551_v10  ;;  %1554 = vrcp.f32 %v2293_v0  ;;  %v866_v29 = vmul.f32 %v2243_v42, %v865_v33  ;;  %v923_v13 = vmul.f32 %v2273_v24, %v922_v20 }
 0x282   :  { %v1079_v34 = vadd.f32 %v1547_v57, %v1078_v1  ;;  %v1108_v49 = vmul.f32 %v1551_v10, %v1107_v28  ;;  %vm1110_vm3 = vweird.f32 %v2250_v51  ;;  %vm2304_vm4 = vcmp.eq.f32.partialorder %v1114_v38, 8.507059e+37  ;;  %v2350_v28 = vpop.xlane.xlu1 %771 }
 0x283   :  { %v1553_v2 = vpop.eup %1552  ;;  %v1117_v42 = vor.u32 1.1754944e-38, %v1116_v14  ;;  %v867_v53 = vmul.f32 %v866_v29, %v2214_v15  ;;  %vm928_vm5 = vcmp.eq.f32.partialorder %v2241_v41, inf  ;;  %vm1112_vm6 = vmor %vm1110_vm3, %vm1111_vm2  ;;  %v1129_v55 = vand.u32 2147483647, %v2269_v18 }
 0x284   :  { %v1083_v32 = vsel %vm1082_vm0, %v1547_v57, %v1079_v34  ;;  %v1121_v47 = vmul.f32 %v1553_v2, %v2269_v18  ;;  %v1109_v56 = vadd.f32 %v1551_v10, %v1108_v49  ;;  %v924_v22 = vmul.f32 0.5, %v923_v13 }
 0x285   :  { %v1088_v44 = vsel %vm1085_vm1, %v1087_v60, %v1083_v32  ;;  %1556 = vrsqrt.f32 %v2301_v7  ;;  %vm1126_vm7 = vweird.f32 %v1553_v2  ;;  %v869_v12 = vsel %vm868_vm12, %v2214_v15, %v867_v53 }
 0x286   :  { %v2312_v48 = vmul.f32 %v1088_v44, %v2090_v62  ;;  %v1122_v51 = vsub.f32 1.0, %v1121_v47  ;;  %v1113_v57 = vsel %vm1112_vm6, %v1551_v10, %v1109_v56  ;;  %v1131_v62 = vand.u32 2147483648, %v2269_v18 }
 0x287   :  { %v1555_v6 = vpop.eup %1554  ;;  %v1118_v25 = vsel %vm2304_vm4, %v1117_v42, %v1113_v57  ;;  %v872_v30 = vsel %vm870_vm14, %v871_v16, %v869_v12  ;;  %v925_v5 = vsub.f32 1.5, %v924_v22  ;;  %vm1125_vm8 = vweird.f32 %v2269_v18 }
 0x288   :  { %1231 = vst [vmem:[#allocation9 + $0x30] sm:$0xff] %v2312_v48  ;;  %v1123_v54 = vmul.f32 %v1553_v2, %v1122_v51  ;;  %v1119_v19 = vmul.f32 %v1118_v25, %v2087_v52  ;;  %v1151_v17 = vmul.f32 %v1555_v6, %v2293_v0  ;;  %v2331_v58 = vadd.f32 1e-07, %v872_v30  ;;  %vm1127_vm10 = vmor %vm1125_vm8, %vm1126_vm7 }
 0x289   :  { %vm1130_vm9 = vcmp.eq.f32.partialorder %v1129_v55, 8.507059e+37  ;;  %v926_v10 = vmul.f32 %v2273_v24, %v925_v5  ;;  %1558 = vrsqrt.f32 %v2309_v35  ;;  %v1132_v15 = vor.u32 1.1754944e-38, %v1131_v62  ;;  %v2341_v24 = vpop.xlane.xlu0 %775 }
 0x28a   :  { %v1124_v26 = vadd.f32 %v1553_v2, %v1123_v54  ;;  %1233 = vst [vmem:[#allocation9 + $0x40] sm:$0xff] %v1119_v19  ;;  %v1152_v16 = vsub.f32 1.0, %v1151_v17  ;;  %1560 = vrcp.f32 %v2331_v58  ;;  %v931_v52 = vand.u32 2147483648, %v2241_v41 }
 0x28b   :  { %v1557_v18 = vpop.eup %1556  ;;  %v1159_v9 = vand.u32 2147483647, %v2293_v0  ;;  %v1161_v39 = vand.u32 2147483648, %v2293_v0  ;;  %v927_v1 = vmul.f32 %v926_v10, %v2241_v41  ;;  %vm1156_vm11 = vweird.f32 %v1555_v6 }
 0x28c   :  { %v1128_v23 = vsel %vm1127_vm10, %v1553_v2, %v1124_v26  ;;  %v1153_v31 = vmul.f32 %v1555_v6, %v1152_v16  ;;  %v946_v38 = vmul.f32 %v1557_v18, %v2301_v7  ;;  %vm1155_vm12 = vweird.f32 %v2293_v0 }
 0x28d   :  { %v1133_v11 = vsel %vm1130_vm9, %v1132_v15, %v1128_v23  ;;  %v929_v34 = vsel %vm928_vm5, %v2241_v41, %v927_v1  ;;  %vm930_vm13 = vcmp.eq.f32.partialorder %v2241_v41, 0.0  ;;  %1562 = vrsqrt.f32 %v2341_v24  ;;  %vm1157_vm14 = vmor %vm1155_vm12, %vm1156_vm11 }
 0x28e   :  { %v1134_v33 = vmul.f32 %v1133_v11, %v2098_v50  ;;  %v1154_v14 = vadd.f32 %v1555_v6, %v1153_v31  ;;  %v932_v20 = vsel %vm930_vm13, %v931_v52, %v929_v34  ;;  %v947_v60 = vmul.f32 %v1557_v18, %v946_v38 }
 0x28f   :  { %v1559_v2 = vpop.eup %1558  ;;  %vm1160_vm15 = vcmp.eq.f32.partialorder %v1159_v9, 8.507059e+37  ;;  %v1162_v50 = vor.u32 1.1754944e-38, %v1161_v39  ;;  %v2353_v32 = vadd.f32 1e-07, %v932_v20  ;;  %1564 = vrsqrt.f32 %v2350_v28 }
 0x290   :  { %1234 = vst [vmem:[#allocation9 + $0x48] sm:$0xff] %v1134_v33  ;;  %v1561_v0 = vpop.eup %1560  ;;  %v1158_v49 = vsel %vm1157_vm14, %v1555_v6, %v1154_v14  ;;  %v948_v29 = vmul.f32 0.5, %v947_v60  ;;  %v898_v13 = vmul.f32 %v1559_v2, %v2309_v35  ;;  %v1099_v47 = vand.u32 2147483647, %v2331_v58 }
 0x291   :  { %v1163_v41 = vsel %vm1160_vm15, %v1162_v50, %v1158_v49  ;;  %v1091_v44 = vmul.f32 %v1561_v0, %v2331_v58  ;;  %1566 = vrcp.f32 %v2353_v32  ;;  %v1101_v56 = vand.u32 2147483648, %v2331_v58 }
 0x292   :  { %v1164_v46 = vmul.f32 %v1163_v41, %v2100_v37  ;;  %v1339_v42 = vadd.f32 %v2162_v36, %v2144_v27  ;;  %v949_v51 = vsub.f32 1.5, %v948_v29  ;;  %vm952_vm0 = vcmp.eq.f32.partialorder %v2301_v7, inf }
 0x293   :  { %v1092_v53 = vsub.f32 1.0, %v1091_v44  ;;  %v899_v55 = vmul.f32 %v1559_v2, %v898_v13  ;;  %v1563_v22 = vpop.eup %1562  ;;  %vm1095_vm1 = vweird.f32 %v2331_v58  ;;  %vm1096_vm2 = vweird.f32 %v1561_v0 }
 0x294   :  { %1236 = vst [vmem:[#allocation9 + $0x58] sm:$0xff] %v1164_v46  ;;  %vm954_vm3 = vcmp.eq.f32.partialorder %v2301_v7, 0.0  ;;  %v955_v37 = vand.u32 2147483648, %v2301_v7  ;;  %v950_v62 = vmul.f32 %v1557_v18, %v949_v51  ;;  %vm904_vm4 = vcmp.eq.f32.partialorder %v2309_v35, inf  ;;  %vm1097_vm7 = vmor %vm1095_vm1, %vm1096_vm2 }
 0x295   :  { %v1093_v57 = vmul.f32 %v1561_v0, %v1092_v53  ;;  %v900_v12 = vmul.f32 0.5, %v899_v55  ;;  %v958_v6 = vmul.f32 %v1563_v22, %v2341_v24  ;;  %v1565_v25 = vpop.eup %1564  ;;  %vm2370_vm5 = vcmp.eq.f32.partialorder %v1099_v47, 8.507059e+37 }
 0x296   :  { %v1102_v30 = vor.u32 1.1754944e-38, %v1101_v56  ;;  %v1174_v5 = vand.u32 2147483647, %v2353_v32  ;;  %vm906_vm6 = vcmp.eq.f32.partialorder %v2309_v35, 0.0  ;;  %v1340_v19 = vadd.f32 %v1339_v42, %v2184_v63 }
 0x297   :  { %v1567_v17 = vpop.eup %1566  ;;  %v1094_v26 = vadd.f32 %v1561_v0, %v1093_v57  ;;  %v951_v10 = vmul.f32 %v950_v62, %v2301_v7  ;;  %v901_v15 = vsub.f32 1.5, %v900_v12  ;;  %v959_v16 = vmul.f32 %v1563_v22, %v958_v6 }
 0x298   :  { %v1166_v52 = vmul.f32 %v1567_v17, %v2353_v32  ;;  %v1176_v18 = vand.u32 2147483648, %v2353_v32  ;;  %v934_v23 = vmul.f32 %v1565_v25, %v2350_v28  ;;  %v1241_v9 = vlaneseq }
 0x299   :  { %v1098_v39 = vsel %vm1097_vm7, %v1561_v0, %v1094_v26  ;;  %v953_v1 = vsel %vm952_vm0, %v2301_v7, %v951_v10  ;;  %v902_v11 = vmul.f32 %v1559_v2, %v901_v15  ;;  %v960_v31 = vmul.f32 0.5, %v959_v16 }
 0x29a   :  { %v1103_v38 = vsel %vm2370_vm5, %v1102_v30, %v1098_v39  ;;  %v1167_v33 = vsub.f32 1.0, %v1166_v52  ;;  %v956_v58 = vsel %vm954_vm3, %v955_v37, %v953_v1  ;;  %v935_v34 = vmul.f32 %v1565_v25, %v934_v23 }
 0x29b   :  { %v1104_v14 = vmul.f32 %v1103_v38, %v2103_v8  ;;  %v2392_v20 = vadd.f32 1e-07, %v956_v58  ;;  %v903_v60 = vmul.f32 %v902_v11, %v2309_v35  ;;  %v961_v50 = vsub.f32 1.5, %v960_v31 }
 0x29c   :  { %v1168_v0 = vmul.f32 %v1567_v17, %v1167_v33  ;;  %vm1171_vm8 = vweird.f32 %v1567_v17  ;;  %v936_v49 = vmul.f32 0.5, %v935_v34  ;;  %v1341_v2 = vadd.f32 %v1340_v19, %v2207_v40 }
 0x29d   :  { %1232 = vst [vmem:[#allocation9 + $0x38] sm:$0xff] %v1104_v14  ;;  %vm1170_vm9 = vweird.f32 %v2353_v32  ;;  %1568 = vrcp.f32 %v2392_v20  ;;  %v907_v7 = vand.u32 2147483648, %v2309_v35  ;;  %v1242_v29 = vshrl.u32 %v1241_v9, 7 }
 0x29e   :  { %v1169_v13 = vadd.f32 %v1567_v17, %v1168_v0  ;;  %v905_v8 = vsel %vm904_vm4, %v2309_v35, %v903_v60  ;;  %v962_v41 = vmul.f32 %v1563_v22, %v961_v50  ;;  %v937_v44 = vsub.f32 1.5, %v936_v49  ;;  %vm1172_vm10 = vmor %vm1170_vm9, %vm1171_vm8 }
 0x29f   :  { %vm1175_vm11 = vcmp.eq.f32.partialorder %v1174_v5, 8.507059e+37  ;;  %v1177_v46 = vor.u32 1.1754944e-38, %v1176_v18  ;;  %v908_v47 = vsel %vm906_vm6, %v907_v7, %v905_v8  ;;  %vm964_vm12 = vcmp.eq.f32.partialorder %v2341_v24, inf }
 0x2a0   :  { %v1173_v56 = vsel %vm1172_vm10, %v1567_v17, %v1169_v13  ;;  %v2404_v32 = vadd.f32 1e-07, %v908_v47  ;;  %v963_v42 = vmul.f32 %v962_v41, %v2341_v24  ;;  %v938_v53 = vmul.f32 %v1565_v25, %v937_v44 }
 0x2a1   :  { %v1178_v51 = vsel %vm1175_vm11, %v1177_v46, %v1173_v56  ;;  %v967_v22 = vand.u32 2147483648, %v2341_v24  ;;  %v1249_v37 = vadd.s32 56, %v1242_v29  ;;  %vm966_vm13 = vcmp.eq.f32.partialorder %v2341_v24, 0.0 }
 0x2a2   :  { %v1179_v55 = vmul.f32 %v1178_v51, %v2114_v59  ;;  %1570 = vrcp.f32 %v2404_v32  ;;  %v965_v35 = vsel %vm964_vm12, %v2341_v24, %v963_v42  ;;  %v939_v62 = vmul.f32 %v938_v53, %v2350_v28 }
 0x2a3   :  { %v1569_v57 = vpop.eup %1568  ;;  %v968_v6 = vsel %vm966_vm13, %v967_v22, %v965_v35  ;;  %vm940_vm14 = vcmp.eq.f32.partialorder %v2350_v28, inf  ;;  %v943_v59 = vand.u32 2147483648, %v2350_v28  ;;  %v1204_v25 = vand.u32 2147483647, %v2392_v20 }
 0x2a4   :  { %1237 = vst [vmem:[#allocation9 + $0x60] sm:$0xff] %v1179_v55  ;;  %v1196_v12 = vmul.f32 %v1569_v57, %v2392_v20  ;;  %v2418_v54 = vadd.f32 1e-07, %v968_v6  ;;  %v941_v30 = vsel %vm940_vm14, %v2350_v28, %v939_v62  ;;  %vm942_vm15 = vcmp.eq.f32.partialorder %v2350_v28, 0.0 }
 0x2a5   :  { %v944_v24 = vsel %vm942_vm15, %v943_v59, %v941_v30  ;;  %vm1282_vm0 = vcmp.lt.s32.totalorder %v1249_v37, 60  ;;  %v1342_v19 = vadd.f32 %v1341_v2, %v2246_v43  ;;  %v1206_v17 = vand.u32 2147483648, %v2392_v20 }
 0x2a6   :  { %v1197_v5 = vsub.f32 1.0, %v1196_v12  ;;  %1572 = vrcp.f32 %v2418_v54  ;;  %v1360_v26 = vmul.f32 %v2144_v27, %v2144_v27  ;;  %v1361_v10 = vmul.f32 %v2162_v36, %v2162_v36 }
 0x2a7   :  { %vm1201_vm1 = vweird.f32 %v1569_v57  ;;  %v2429_v52 = vadd.f32 1e-07, %v944_v24  ;;  %v1343_v28 = vadd.f32 %v1342_v19, %v2278_v3  ;;  %vm1200_vm2 = vweird.f32 %v2392_v20 }
 0x2a8   :  { %v1571_v15 = vpop.eup %1570  ;;  %v1198_v16 = vmul.f32 %v1569_v57, %v1197_v5  ;;  %vm2433_vm3 = vcmp.eq.f32.partialorder %v1204_v25, 8.507059e+37  ;;  %v1330_v9 = vsel %vm1282_vm0, %v1104_v14, 0.0  ;;  %v1362_v39 = vmul.f32 %v2184_v63, %v2184_v63  ;;  %vm1202_vm4 = vmor %vm1200_vm2, %vm1201_vm1 }
 0x2a9   :  { %v1136_v23 = vmul.f32 %v1571_v15, %v2404_v32  ;;  %1574 = vrcp.f32 %v2429_v52  ;;  %v1344_v36 = vadd.f32 %v1343_v28, %v2312_v48  ;;  %v1207_v1 = vor.u32 1.1754944e-38, %v1206_v17 }
 0x2aa   :  { %v1199_v27 = vadd.f32 %v1569_v57, %v1198_v16  ;;  %v1144_v31 = vand.u32 2147483647, %v2404_v32  ;;  %v1146_v38 = vand.u32 2147483648, %v2404_v32  ;;  %v1363_v34 = vmul.f32 %v2207_v40, %v2207_v40 }
 0x2ab   :  { %v1137_v11 = vsub.f32 1.0, %v1136_v23  ;;  %v1345_v58 = vadd.f32 %v1344_v36, %v1330_v9  ;;  %v1376_v14 = vadd.f32 %v1361_v10, %v1360_v26  ;;  %vm1140_vm5 = vweird.f32 %v2404_v32 }
 0x2ac   :  { %v1203_v33 = vsel %vm1202_vm4, %v1569_v57, %v1199_v27  ;;  %v1573_v20 = vpop.eup %1572  ;;  %vm1141_vm6 = vweird.f32 %v1571_v15  ;;  %v1364_v49 = vmul.f32 %v2246_v43, %v2246_v43  ;;  %vm1145_vm7 = vcmp.eq.f32.partialorder %v1144_v31, 8.507059e+37 }
 0x2ad   :  { %v1208_v60 = vsel %vm2433_vm3, %v1207_v1, %v1203_v33  ;;  %v1138_v50 = vmul.f32 %v1571_v15, %v1137_v11  ;;  %v1211_v0 = vmul.f32 %v1573_v20, %v2418_v54  ;;  %v1377_v2 = vadd.f32 %v1376_v14, %v1362_v39  ;;  %vm1142_vm8 = vmor %vm1140_vm5, %vm1141_vm6 }
 0x2ae   :  { %v1209_v63 = vmul.f32 %v1208_v60, %v2116_v45  ;;  %v1147_v40 = vor.u32 1.1754944e-38, %v1146_v38  ;;  %v1219_v29 = vand.u32 2147483647, %v2418_v54  ;;  %v1354_v41 = vrot.slane %v1345_v58, 4 }
 0x2af   :  { %v1139_v7 = vadd.f32 %v1571_v15, %v1138_v50  ;;  %v1575_v13 = vpop.eup %1574  ;;  %v1212_v8 = vsub.f32 1.0, %v1211_v0  ;;  %v1365_v44 = vmul.f32 %v2278_v3, %v2278_v3  ;;  %v1378_v45 = vadd.f32 %v1377_v2, %v1363_v34 }
 0x2b0   :  { %1239 = vst [vmem:[#allocation9 + $0x70] sm:$0xff] %v1209_v63  ;;  %v1221_v47 = vand.u32 2147483648, %v2418_v54  ;;  %v1181_v43 = vmul.f32 %v1575_v13, %v2429_v52  ;;  %v1366_v56 = vmul.f32 %v2312_v48, %v2312_v48  ;;  %vm1216_vm9 = vweird.f32 %v1573_v20 }
 0x2b1   :  { %v1143_v46 = vsel %vm1142_vm8, %v1571_v15, %v1139_v7  ;;  %v1213_v42 = vmul.f32 %v1573_v20, %v1212_v8  ;;  %v1379_v53 = vadd.f32 %v1378_v45, %v1364_v49  ;;  %vm1215_vm10 = vweird.f32 %v2418_v54 }
 0x2b2   :  { %v1148_v32 = vsel %vm1145_vm7, %v1147_v40, %v1143_v46  ;;  %v1182_v55 = vsub.f32 1.0, %v1181_v43  ;;  %v1191_v3 = vand.u32 2147483648, %v2429_v52  ;;  %v1355_v37 = vadd.f32 %v1354_v41, %v1345_v58  ;;  %vm1217_vm11 = vmor %vm1215_vm10, %vm1216_vm9 }
 0x2b3   :  { %v1149_v51 = vmul.f32 %v1148_v32, %v2118_v61  ;;  %v1214_v22 = vadd.f32 %v1573_v20, %v1213_v42  ;;  %v1367_v57 = vmul.f32 %v1330_v9, %v1330_v9  ;;  %v1380_v35 = vadd.f32 %v1379_v53, %v1365_v44 }
 0x2b4   :  { %v1222_v62 = vor.u32 1.1754944e-38, %v1221_v47  ;;  %v1183_v12 = vmul.f32 %v1575_v13, %v1182_v55  ;;  %vm1186_vm12 = vweird.f32 %v1575_v13  ;;  %v1189_v48 = vand.u32 2147483647, %v2429_v52 }
 0x2b5   :  { %1235 = vst [vmem:[#allocation9 + $0x50] sm:$0xff] %v1149_v51  ;;  %v1218_v6 = vsel %vm1217_vm11, %v1573_v20, %v1214_v22  ;;  %vm1220_vm13 = vcmp.eq.f32.partialorder %v1219_v29, 8.507059e+37  ;;  %v1381_v59 = vadd.f32 %v1380_v35, %v1366_v56  ;;  %vm1185_vm14 = vweird.f32 %v2429_v52 }
 0x2b6   :  { %v1223_v61 = vsel %vm1220_vm13, %v1222_v62, %v1218_v6  ;;  %v1184_v25 = vadd.f32 %v1575_v13, %v1183_v12  ;;  %vm1187_vm15 = vmor %vm1185_vm14, %vm1186_vm12  ;;  %v1192_v30 = vor.u32 1.1754944e-38, %v1191_v3  ;;  %v1356_v5 = vrot.slane %v1355_v37, 2 }
 0x2b7   :  { %v1224_v54 = vmul.f32 %v1223_v61, %v2128_v4  ;;  %v1382_v24 = vadd.f32 %v1381_v59, %v1367_v57  ;;  %vm1190_vm0 = vcmp.eq.f32.partialorder %v1189_v48, 8.507059e+37  ;;  %vm1397_vm1 = vcmask 1040384  }
 0x2b8   :  { %v1188_v19 = vsel %vm1187_vm15, %v1575_v13, %v1184_v25  ;;  %v1357_v4 = vadd.f32 %v1356_v5, %v1355_v37 }
 0x2b9   :  { %1240 = vst [vmem:[#allocation9 + $0x78] sm:$0xff] %v1224_v54  ;;  %v1193_v17 = vsel %vm1190_vm0, %v1192_v30, %v1188_v19  ;;  %v1391_v26 = vrot.slane %v1382_v24, 4 }
 0x2ba   :  { %v1194_v10 = vmul.f32 %v1193_v17, %v2130_v21  ;;  %v1358_v52 = vrot.slane %v1357_v4, 1 }
 0x2bb   :  { %v1392_v15 = vadd.f32 %v1391_v26, %v1382_v24 }
 0x2bc   :  { %1238 = vst [vmem:[#allocation9 + $0x68] sm:$0xff] %v1194_v10  ;;  %v1359_v21 = vadd.f32 %v1358_v52, %v1357_v4 }
 0x2bd   :  { %1412 = dma.vmem_to_hbm [thread:$0]  %s1405_s9, 2048, %s1407_s12, [#allocation5], %s1705_s26, %s1705_s26, %s1706_s27   ;;  %v1393_v16 = vrot.slane %v1392_v15, 2 }
 0x2bf   :  { %v1394_v28 = vadd.f32 %v1393_v16, %v1392_v15 }
 0x2c1   :  { %v1395_v18 = vrot.slane %v1394_v28, 1 }
 0x2c3   :  { %v1396_v23 = vadd.f32 %v1395_v18, %v1394_v28 }
 0x2c5   :  { %v1398_v9 = vsel %vm1397_vm1, %v1359_v21, %v1396_v23 }
 0x2c6   :  { %1399 = vst [vmem:[#allocation10] sm:$0x3] %v1398_v9 }
 0x2c7   :  { %1423 = dma.vmem_to_hbm [thread:$0]  %s1419_s13, 32, %s1421_s16, [#allocation11]  }
 0x2c8   :  { %1700 = dma.done.wait [#allocation5], 2048  }
 0x2c9   :  { %1701 = vsyncadd [#allocation5], 4294965248 }
 0x2ca   :  { %1702 = dma.done.wait [#allocation11], 32  }
 0x2cb   :  { %1703 = vsyncadd [#allocation11], 4294967264 }
 0x2cc   :  { %1432 = vsyncpa [#allocation4], 1 }
 0x2cd   :  { %1433 = vsyncpa [#allocation7], 1 }
 0x2ce   :  { %1434 = vsyncpa [#allocation5], 1 }
 0x2cf   :  { %1435 = vsyncpa [#allocation11], 1 }

</bundles_post_ra>
